<compile_context>
chip_gen: v5e
topology: v5e:2x2
jax: 0.10.0
libtpu: 0.0.40
codegen_flags: <defaults>
</compile_context>

<pallas_src>
import math
from functools import partial

import jax
import jax.numpy as jnp
from jax import lax
from jax.experimental import pallas as pl
from jax.experimental.pallas import tpu as pltpu


# ----------------------------- Pallas kernels ------------------------------

def _fused_matmul_kernel(x_ref, w_ref, s_ref, b_ref, o_ref, acc_ref, *, relu):
    """Tiled (x @ w) with K-accumulation; epilogue: *scale + bias [+ReLU]."""
    k = pl.program_id(2)

    @pl.when(k == 0)
    def _():
        acc_ref[...] = jnp.zeros_like(acc_ref)

    acc_ref[...] += jnp.dot(x_ref[...], w_ref[...],
                            preferred_element_type=jnp.float32)

    @pl.when(k == pl.num_programs(2) - 1)
    def _():
        out = acc_ref[...] * s_ref[...] + b_ref[...]
        if relu:
            out = jnp.maximum(out, 0.0)
        o_ref[...] = out


def _fused_matmul_res_kernel(x_ref, w_ref, s_ref, b_ref, r_ref, o_ref, acc_ref,
                             *, relu):
    """Same as above, plus residual add in the epilogue (last K step only)."""
    k = pl.program_id(2)

    @pl.when(k == 0)
    def _():
        acc_ref[...] = jnp.zeros_like(acc_ref)

    acc_ref[...] += jnp.dot(x_ref[...], w_ref[...],
                            preferred_element_type=jnp.float32)

    @pl.when(k == pl.num_programs(2) - 1)
    def _():
        out = acc_ref[...] * s_ref[...] + b_ref[...] + r_ref[...]
        if relu:
            out = jnp.maximum(out, 0.0)
        o_ref[...] = out


# ----------------------------- helpers --------------------------------------

def _rup(x, m):
    return (x + m - 1) // m * m


def _largest_tile(dim, candidates):
    for c in candidates:
        if c <= dim and dim % c == 0:
            return c
    return dim


def fused_matmul_bn(x2d, prep, residual=None, relu=False):
    """out = relu?( (x2d @ W) * scale + bias [+ residual] ).

    x2d: (M, K) bf16 activations (unpadded).
    prep: dict with pre-padded bf16 'w2d' (Kp, Np), f32 'scale'/'bias' (1, Np).
    residual: optional (M, N) f32.
    Returns (M, N) f32.
    """
    M, K = x2d.shape
    Kp, Np = prep['w2d'].shape
    N = prep['cout']
    Mp = _rup(M, 16)                      # bf16 sublane packing

    tm = _largest_tile(Mp, (256, 128, 64, 32, 16))
    tn = _largest_tile(Np, (256, 128))
    tk = _largest_tile(Kp, (512, 384, 256, 128))

    xp = jnp.pad(x2d, ((0, Mp - M), (0, Kp - K)))

    args = [xp, prep['w2d'], prep['scale'], prep['bias']]
    in_specs = [
        pl.BlockSpec((tm, tk), lambda i, j, k: (i, k)),
        pl.BlockSpec((tk, tn), lambda i, j, k: (k, j)),
        pl.BlockSpec((1, tn), lambda i, j, k: (0, j)),
        pl.BlockSpec((1, tn), lambda i, j, k: (0, j)),
    ]
    if residual is not None:
        rp = jnp.pad(residual.astype(jnp.float32), ((0, Mp - M), (0, Np - N)))
        args.append(rp)
        # Block index ignores k -> residual tile fetched once per output tile.
        in_specs.append(pl.BlockSpec((tm, tn), lambda i, j, k: (i, j)))
        kernel = partial(_fused_matmul_res_kernel, relu=relu)
    else:
        kernel = partial(_fused_matmul_kernel, relu=relu)

    out = pl.pallas_call(
        kernel,
        out_shape=jax.ShapeDtypeStruct((Mp, Np), jnp.float32),
        grid=(Mp // tm, Np // tn, Kp // tk),
        in_specs=in_specs,
        out_specs=pl.BlockSpec((tm, tn), lambda i, j, k: (i, j)),
        scratch_shapes=[pltpu.VMEM((tm, tn), jnp.float32)],
        compiler_params=pltpu.CompilerParams(
            dimension_semantics=("parallel", "parallel", "arbitrary")),
    )(*args)
    return out[:M, :N]


def _im2col(x, kh, kw, stride, padding):
    """x: (B,H,W,C) NHWC -> (B*Ho*Wo, kh*kw*C), tap-major / channel-minor."""
    if padding > 0:
        x = jnp.pad(x, ((0, 0), (padding, padding), (padding, padding), (0, 0)))
    B, H, W, C = x.shape
    Ho = (H - kh) // stride + 1
    Wo = (W - kw) // stride + 1
    cols = [x[:, i:i + (Ho - 1) * stride + 1:stride,
              j:j + (Wo - 1) * stride + 1:stride, :]
            for i in range(kh) for j in range(kw)]
    patches = jnp.concatenate(cols, axis=-1)
    return patches.reshape(B * Ho * Wo, kh * kw * C), Ho, Wo


def conv_bn(x_nhwc, prep, *, stride, padding, relu=False, residual=None):
    """Fused Conv2d(no bias)+BN(eval)[+residual][+ReLU] via the tiled kernel."""
    B = x_nhwc.shape[0]
    kh, kw, cout = prep['kh'], prep['kw'], prep['cout']
    x_bf16 = x_nhwc.astype(jnp.bfloat16)          # bf16 patches -> half traffic
    x2d, Ho, Wo = _im2col(x_bf16, kh, kw, stride, padding)
    r2d = residual.reshape(B * Ho * Wo, cout) if residual is not None else None
    out2d = fused_matmul_bn(x2d, prep, residual=r2d, relu=relu)
    return out2d.reshape(B, Ho, Wo, cout)


# ----------------------------- parameters ----------------------------------

def _kaiming_conv(key, cout, cin, kh, kw):
    fan_out = cout * kh * kw
    std = math.sqrt(2.0 / fan_out)
    return jax.random.normal(key, (cout, cin, kh, kw), jnp.float32) * std


def _init_bn(key, c):
    k1, k2, k3, k4 = jax.random.split(key, 4)
    return dict(
        gamma=1.0 + 0.2 * jax.random.normal(k1, (c,), jnp.float32),
        beta=0.1 * jax.random.normal(k2, (c,), jnp.float32),
        mean=0.1 * jax.random.normal(k3, (c,), jnp.float32),
        var=1.0 + 0.3 * jax.random.uniform(k4, (c,), jnp.float32),
    )


def prep_conv_bn(w, bn, eps=1e-5):
    """Fold BN into per-channel scale/bias; transpose+pad+cast weight ONCE."""
    cout, cin, kh, kw = w.shape
    K = kh * kw * cin
    Kp, Np = _rup(K, 128), _rup(cout, 128)
    w2d = jnp.transpose(w, (2, 3, 1, 0)).reshape(K, cout)      # (kh,kw,cin)->K
    scale = bn['gamma'] / jnp.sqrt(bn['var'] + eps)
    bias = bn['beta'] - bn['mean'] * scale
    w2d_p = jnp.zeros((Kp, Np), jnp.bfloat16).at[:K, :cout].set(
        w2d.astype(jnp.bfloat16))
    scale_p = jnp.zeros((1, Np), jnp.float32).at[0, :cout].set(scale)
    bias_p = jnp.zeros((1, Np), jnp.float32).at[0, :cout].set(bias)
    return dict(w2d=w2d_p, scale=scale_p, bias=bias_p,
                kh=kh, kw=kw, cin=cin, cout=cout)


def make_basic_block_params(key, inplanes, planes, stride=1):
    keys = jax.random.split(key, 6)
    conv1_w = _kaiming_conv(keys[0], planes, inplanes, 3, 3)
    bn1 = _init_bn(keys[1], planes)
    conv2_w = _kaiming_conv(keys[2], planes, planes, 3, 3)
    bn2 = _init_bn(keys[3], planes)
    params = dict(stride=stride,
                  conv1_w=conv1_w, bn1=bn1, conv2_w=conv2_w, bn2=bn2,
                  conv1_p=prep_conv_bn(conv1_w, bn1),
                  conv2_p=prep_conv_bn(conv2_w, bn2))
    if stride != 1 or inplanes != planes:
        down_w = _kaiming_conv(keys[4], planes, inplanes, 1, 1)
        down_bn = _init_bn(keys[5], planes)
        params.update(down_w=down_w, down_bn=down_bn,
                      down_p=prep_conv_bn(down_w, down_bn))
    return params


# ----------------------------- forward --------------------------------------

def basic_block_forward(x_nchw, params):
    """BasicBlock.forward: conv1->bn1->relu->conv2->bn2 (+downsample) +id, relu."""
    x = jnp.transpose(x_nchw, (0, 2, 3, 1))                    # NCHW -> NHWC
    s = params['stride']
    out = conv_bn(x, params['conv1_p'], stride=s, padding=1, relu=True)
    if 'down_p' in params:
        identity = conv_bn(x, params['down_p'], stride=s, padding=0, relu=False)
    else:
        identity = x
    # conv2 + bn2 + residual add + final ReLU fully fused in the Pallas kernel.
    out = conv_bn(out, params['conv2_p'], stride=1, padding=1, relu=True,
                  residual=identity)
    return jnp.transpose(out, (0, 3, 1, 2))                    # NHWC -> NCHW


# ----------------------------- f32 reference ---------------------------------

def basic_block_reference(x_nchw, params):
    x = jnp.transpose(x_nchw, (0, 2, 3, 1))
    s = params['stride']

    def conv(inp, w, stride, pad):
        return lax.conv_general_dilated(
            inp, jnp.transpose(w, (2, 3, 1, 0)),
            window_strides=(stride, stride),
            padding=[(pad, pad), (pad, pad)],
            dimension_numbers=('NHWC', 'HWIO', 'NHWC'))

    def bn(y, b):
        return (y - b['mean']) / jnp.sqrt(b['var'] + 1e-5) * b['gamma'] + b['beta']

    out = jax.nn.relu(bn(conv(x, params['conv1_w'], s, 1), params['bn1']))
    out = bn(conv(out, params['conv2_w'], 1, 1), params['bn2'])
    if 'down_w' in params:
        identity = bn(conv(x, params['down_w'], s, 0), params['down_bn'])
    else:
        identity = x
    out = jax.nn.relu(out + identity)
    return jnp.transpose(out, (0, 3, 1, 2))


# ----------------------------- main ------------------------------------------

if __name__ == "__main__":
    key = jax.random.PRNGKey(0)
    kx, kp = jax.random.split(key)

    # BasicBlock(inplanes=32, planes=64, stride=2) with downsample (1x1 conv+BN)
    B, Cin, H, W = 2, 32, 16, 16
    planes, stride = 64, 2
    x = jax.random.normal(kx, (B, Cin, H, W), jnp.float32)     # NCHW, like PyTorch
    params = make_basic_block_params(kp, Cin, planes, stride=stride)

    fwd = jax.jit(lambda inp: basic_block_forward(inp, params))
    out = jax.block_until_ready(fwd(x))

    assert out.shape == (B, planes, H // stride, W // stride), out.shape
    assert bool(jnp.all(jnp.isfinite(out)))

    # Check against pure-JAX f32 reference (loose tol: bf16 MXU inputs).
    ref = basic_block_reference(x, params)
    max_err = float(jnp.max(jnp.abs(out - ref)))
    assert max_err < 0.15, f"max abs err {max_err}"

    print("KERNEL_OK")
</pallas_src>

<mosaic_0001>
module attributes {stable_mosaic.version = 11 : i64} {
  func.func @_fused_matmul_kernel(%arg0: i32, %arg1: i32, %arg2: i32, %arg3: memref<128x128xbf16, #tpu.memory_space<vmem>>, %arg4: memref<128x128xbf16, #tpu.memory_space<vmem>>, %arg5: memref<1x128xf32, #tpu.memory_space<vmem>>, %arg6: memref<1x128xf32, #tpu.memory_space<vmem>>, %arg7: memref<128x128xf32, #tpu.memory_space<vmem>>, %arg8: memref<128x128xf32, #tpu.memory_space<vmem>>) attributes {dimension_semantics = [#tpu.dimension_semantics<parallel>, #tpu.dimension_semantics<parallel>, #tpu.dimension_semantics<arbitrary>], iteration_bounds = array<i64: 1, 1, 1>, scalar_prefetch = 0 : i64, scratch_operands = 1 : i64, tpu.core_type = #tpu.core_type<tc>, window_params = [{transform_indices = @transform_0, window_bounds = array<i64: 128, 128>}, {transform_indices = @transform_1, window_bounds = array<i64: 128, 128>}, {transform_indices = @transform_2, window_bounds = array<i64: 1, 128>}, {transform_indices = @transform_3, window_bounds = array<i64: 1, 128>}, {transform_indices = @transform_4, window_bounds = array<i64: 128, 128>}]} {
    %c0_i32 = arith.constant 0 : i32
    %0 = arith.cmpi eq, %arg2, %c0_i32 : i32
    %1 = arith.extui %0 : i1 to i32
    %c0_i32_0 = arith.constant 0 : i32
    %2 = arith.cmpi ne, %1, %c0_i32_0 : i32
    scf.if %2 {
      %cst_10 = arith.constant 0.000000e+00 : f32
      %12 = vector.broadcast %cst_10 : f32 to vector<128x128xf32>
      %c0_11 = arith.constant 0 : index
      %c0_12 = arith.constant 0 : index
      %13 = vector.load %arg8[%c0_11, %c0_12] : memref<128x128xf32, #tpu.memory_space<vmem>>, vector<128x128xf32>
      tpu.vector_store %arg8[%c0_11, %c0_12], %12 {strides = array<i32>} : memref<128x128xf32, #tpu.memory_space<vmem>>, vector<128x128xf32>,
    } else {
    }
    %c0 = arith.constant 0 : index
    %c0_1 = arith.constant 0 : index
    %3 = vector.load %arg8[%c0, %c0_1] : memref<128x128xf32, #tpu.memory_space<vmem>>, vector<128x128xf32>
    %c0_2 = arith.constant 0 : index
    %c0_3 = arith.constant 0 : index
    %4 = vector.load %arg3[%c0_2, %c0_3] : memref<128x128xbf16, #tpu.memory_space<vmem>>, vector<128x128xbf16>
    %c0_4 = arith.constant 0 : index
    %c0_5 = arith.constant 0 : index
    %5 = vector.load %arg4[%c0_4, %c0_5] : memref<128x128xbf16, #tpu.memory_space<vmem>>, vector<128x128xbf16>
    %cst = arith.constant dense<0.000000e+00> : vector<128x128xf32>
    %6 = tpu.matmul %4, %5, %cst {dimension_numbers = #tpu.dot_dimension_numbers<[1], [0], [0], [1], [0, 0, 1, 1], [], []>} : vector<128x128xbf16>, vector<128x128xbf16>, vector<128x128xf32> -> vector<128x128xf32>
    %7 = arith.addf %3, %6 : vector<128x128xf32>
    %c0_6 = arith.constant 0 : index
    %c0_7 = arith.constant 0 : index
    %8 = vector.load %arg8[%c0_6, %c0_7] : memref<128x128xf32, #tpu.memory_space<vmem>>, vector<128x128xf32>
    tpu.vector_store %arg8[%c0_6, %c0_7], %7 {strides = array<i32>} : memref<128x128xf32, #tpu.memory_space<vmem>>, vector<128x128xf32>,
    %c0_i32_8 = arith.constant 0 : i32
    %9 = arith.cmpi eq, %arg2, %c0_i32_8 : i32
    %10 = arith.extui %9 : i1 to i32
    %c0_i32_9 = arith.constant 0 : i32
    %11 = arith.cmpi ne, %10, %c0_i32_9 : i32
    scf.if %11 {
      %c0_10 = arith.constant 0 : index
      %c0_11 = arith.constant 0 : index
      %12 = vector.load %arg8[%c0_10, %c0_11] : memref<128x128xf32, #tpu.memory_space<vmem>>, vector<128x128xf32>
      %c0_12 = arith.constant 0 : index
      %c0_13 = arith.constant 0 : index
      %13 = vector.load %arg5[%c0_12, %c0_13] : memref<1x128xf32, #tpu.memory_space<vmem>>, vector<1x128xf32>
      %14 = vector.broadcast %13 : vector<1x128xf32> to vector<128x128xf32>
      %15 = arith.mulf %12, %14 : vector<128x128xf32>
      %c0_14 = arith.constant 0 : index
      %c0_15 = arith.constant 0 : index
      %16 = vector.load %arg6[%c0_14, %c0_15] : memref<1x128xf32, #tpu.memory_space<vmem>>, vector<1x128xf32>
      %17 = vector.broadcast %16 : vector<1x128xf32> to vector<128x128xf32>
      %18 = arith.addf %15, %17 : vector<128x128xf32>
      %c0_16 = arith.constant 0 : index
      %c0_17 = arith.constant 0 : index
      %19 = vector.load %arg7[%c0_16, %c0_17] : memref<128x128xf32, #tpu.memory_space<vmem>>, vector<128x128xf32>
      tpu.vector_store %arg7[%c0_16, %c0_17], %18 {strides = array<i32>} : memref<128x128xf32, #tpu.memory_space<vmem>>, vector<128x128xf32>,
    } else {
    }
    return
  }
  func.func @transform_0(%arg0: i32, %arg1: i32, %arg2: i32) -> (i32, i32) {
    %c0_i32 = arith.constant 0 : i32
    return %arg0, %arg2 : i32, i32
  }
  func.func @transform_1(%arg0: i32, %arg1: i32, %arg2: i32) -> (i32, i32) {
    %c0_i32 = arith.constant 0 : i32
    return %arg2, %arg1 : i32, i32
  }
  func.func @transform_2(%arg0: i32, %arg1: i32, %arg2: i32) -> (i32, i32) {
    %c0_i32 = arith.constant 0 : i32
    %c0_i32_0 = arith.constant 0 : i32
    return %c0_i32, %arg1 : i32, i32
  }
  func.func @transform_3(%arg0: i32, %arg1: i32, %arg2: i32) -> (i32, i32) {
    %c0_i32 = arith.constant 0 : i32
    %c0_i32_0 = arith.constant 0 : i32
    return %c0_i32, %arg1 : i32, i32
  }
  func.func @transform_4(%arg0: i32, %arg1: i32, %arg2: i32) -> (i32, i32) {
    %c0_i32 = arith.constant 0 : i32
    return %arg0, %arg1 : i32, i32
  }
}

module attributes {stable_mosaic.version = 11 : i64} {
  func.func @_fused_matmul_kernel(%arg0: i32, %arg1: i32, %arg2: i32, %arg3: memref<128x384xbf16, #tpu.memory_space<vmem>>, %arg4: memref<384x128xbf16, #tpu.memory_space<vmem>>, %arg5: memref<1x128xf32, #tpu.memory_space<vmem>>, %arg6: memref<1x128xf32, #tpu.memory_space<vmem>>, %arg7: memref<128x128xf32, #tpu.memory_space<vmem>>, %arg8: memref<128x128xf32, #tpu.memory_space<vmem>>) attributes {dimension_semantics = [#tpu.dimension_semantics<parallel>, #tpu.dimension_semantics<parallel>, #tpu.dimension_semantics<arbitrary>], iteration_bounds = array<i64: 1, 1, 1>, scalar_prefetch = 0 : i64, scratch_operands = 1 : i64, tpu.core_type = #tpu.core_type<tc>, window_params = [{transform_indices = @transform_0, window_bounds = array<i64: 128, 384>}, {transform_indices = @transform_1, window_bounds = array<i64: 384, 128>}, {transform_indices = @transform_2, window_bounds = array<i64: 1, 128>}, {transform_indices = @transform_3, window_bounds = array<i64: 1, 128>}, {transform_indices = @transform_4, window_bounds = array<i64: 128, 128>}]} {
    %c0_i32 = arith.constant 0 : i32
    %0 = arith.cmpi eq, %arg2, %c0_i32 : i32
    %1 = arith.extui %0 : i1 to i32
    %c0_i32_0 = arith.constant 0 : i32
    %2 = arith.cmpi ne, %1, %c0_i32_0 : i32
    scf.if %2 {
      %cst_10 = arith.constant 0.000000e+00 : f32
      %12 = vector.broadcast %cst_10 : f32 to vector<128x128xf32>
      %c0_11 = arith.constant 0 : index
      %c0_12 = arith.constant 0 : index
      %13 = vector.load %arg8[%c0_11, %c0_12] : memref<128x128xf32, #tpu.memory_space<vmem>>, vector<128x128xf32>
      tpu.vector_store %arg8[%c0_11, %c0_12], %12 {strides = array<i32>} : memref<128x128xf32, #tpu.memory_space<vmem>>, vector<128x128xf32>,
    } else {
    }
    %c0 = arith.constant 0 : index
    %c0_1 = arith.constant 0 : index
    %3 = vector.load %arg8[%c0, %c0_1] : memref<128x128xf32, #tpu.memory_space<vmem>>, vector<128x128xf32>
    %c0_2 = arith.constant 0 : index
    %c0_3 = arith.constant 0 : index
    %4 = vector.load %arg3[%c0_2, %c0_3] : memref<128x384xbf16, #tpu.memory_space<vmem>>, vector<128x384xbf16>
    %c0_4 = arith.constant 0 : index
    %c0_5 = arith.constant 0 : index
    %5 = vector.load %arg4[%c0_4, %c0_5] : memref<384x128xbf16, #tpu.memory_space<vmem>>, vector<384x128xbf16>
    %cst = arith.constant dense<0.000000e+00> : vector<128x128xf32>
    %6 = tpu.matmul %4, %5, %cst {dimension_numbers = #tpu.dot_dimension_numbers<[1], [0], [0], [1], [0, 0, 1, 1], [], []>} : vector<128x384xbf16>, vector<384x128xbf16>, vector<128x128xf32> -> vector<128x128xf32>
    %7 = arith.addf %3, %6 : vector<128x128xf32>
    %c0_6 = arith.constant 0 : index
    %c0_7 = arith.constant 0 : index
    %8 = vector.load %arg8[%c0_6, %c0_7] : memref<128x128xf32, #tpu.memory_space<vmem>>, vector<128x128xf32>
    tpu.vector_store %arg8[%c0_6, %c0_7], %7 {strides = array<i32>} : memref<128x128xf32, #tpu.memory_space<vmem>>, vector<128x128xf32>,
    %c0_i32_8 = arith.constant 0 : i32
    %9 = arith.cmpi eq, %arg2, %c0_i32_8 : i32
    %10 = arith.extui %9 : i1 to i32
    %c0_i32_9 = arith.constant 0 : i32
    %11 = arith.cmpi ne, %10, %c0_i32_9 : i32
    scf.if %11 {
      %c0_10 = arith.constant 0 : index
      %c0_11 = arith.constant 0 : index
      %12 = vector.load %arg8[%c0_10, %c0_11] : memref<128x128xf32, #tpu.memory_space<vmem>>, vector<128x128xf32>
      %c0_12 = arith.constant 0 : index
      %c0_13 = arith.constant 0 : index
      %13 = vector.load %arg5[%c0_12, %c0_13] : memref<1x128xf32, #tpu.memory_space<vmem>>, vector<1x128xf32>
      %14 = vector.broadcast %13 : vector<1x128xf32> to vector<128x128xf32>
      %15 = arith.mulf %12, %14 : vector<128x128xf32>
      %c0_14 = arith.constant 0 : index
      %c0_15 = arith.constant 0 : index
      %16 = vector.load %arg6[%c0_14, %c0_15] : memref<1x128xf32, #tpu.memory_space<vmem>>, vector<1x128xf32>
      %17 = vector.broadcast %16 : vector<1x128xf32> to vector<128x128xf32>
      %18 = arith.addf %15, %17 : vector<128x128xf32>
      %cst_16 = arith.constant 0.000000e+00 : f32
      %19 = vector.broadcast %cst_16 : f32 to vector<128x128xf32>
      %20 = arith.maximumf %18, %19 : vector<128x128xf32>
      %c0_17 = arith.constant 0 : index
      %c0_18 = arith.constant 0 : index
      %21 = vector.load %arg7[%c0_17, %c0_18] : memref<128x128xf32, #tpu.memory_space<vmem>>, vector<128x128xf32>
      tpu.vector_store %arg7[%c0_17, %c0_18], %20 {strides = array<i32>} : memref<128x128xf32, #tpu.memory_space<vmem>>, vector<128x128xf32>,
    } else {
    }
    return
  }
  func.func @transform_0(%arg0: i32, %arg1: i32, %arg2: i32) -> (i32, i32) {
    %c0_i32 = arith.constant 0 : i32
    return %arg0, %arg2 : i32, i32
  }
  func.func @transform_1(%arg0: i32, %arg1: i32, %arg2: i32) -> (i32, i32) {
    %c0_i32 = arith.constant 0 : i32
    return %arg2, %arg1 : i32, i32
  }
  func.func @transform_2(%arg0: i32, %arg1: i32, %arg2: i32) -> (i32, i32) {
    %c0_i32 = arith.constant 0 : i32
    %c0_i32_0 = arith.constant 0 : i32
    return %c0_i32, %arg1 : i32, i32
  }
  func.func @transform_3(%arg0: i32, %arg1: i32, %arg2: i32) -> (i32, i32) {
    %c0_i32 = arith.constant 0 : i32
    %c0_i32_0 = arith.constant 0 : i32
    return %c0_i32, %arg1 : i32, i32
  }
  func.func @transform_4(%arg0: i32, %arg1: i32, %arg2: i32) -> (i32, i32) {
    %c0_i32 = arith.constant 0 : i32
    return %arg0, %arg1 : i32, i32
  }
}

module attributes {stable_mosaic.version = 11 : i64} {
  func.func @_fused_matmul_res_kernel(%arg0: i32, %arg1: i32, %arg2: i32, %arg3: memref<128x128xbf16, #tpu.memory_space<vmem>>, %arg4: memref<128x128xbf16, #tpu.memory_space<vmem>>, %arg5: memref<1x128xf32, #tpu.memory_space<vmem>>, %arg6: memref<1x128xf32, #tpu.memory_space<vmem>>, %arg7: memref<128x128xf32, #tpu.memory_space<vmem>>, %arg8: memref<128x128xf32, #tpu.memory_space<vmem>>, %arg9: memref<128x128xf32, #tpu.memory_space<vmem>>) attributes {dimension_semantics = [#tpu.dimension_semantics<parallel>, #tpu.dimension_semantics<parallel>, #tpu.dimension_semantics<arbitrary>], iteration_bounds = array<i64: 1, 1, 5>, scalar_prefetch = 0 : i64, scratch_operands = 1 : i64, tpu.core_type = #tpu.core_type<tc>, window_params = [{transform_indices = @transform_0, window_bounds = array<i64: 128, 128>}, {transform_indices = @transform_1, window_bounds = array<i64: 128, 128>}, {transform_indices = @transform_2, window_bounds = array<i64: 1, 128>}, {transform_indices = @transform_3, window_bounds = array<i64: 1, 128>}, {transform_indices = @transform_4, window_bounds = array<i64: 128, 128>}, {transform_indices = @transform_5, window_bounds = array<i64: 128, 128>}]} {
    %c0_i32 = arith.constant 0 : i32
    %0 = arith.cmpi eq, %arg2, %c0_i32 : i32
    %1 = arith.extui %0 : i1 to i32
    %c0_i32_0 = arith.constant 0 : i32
    %2 = arith.cmpi ne, %1, %c0_i32_0 : i32
    scf.if %2 {
      %cst_9 = arith.constant 0.000000e+00 : f32
      %12 = vector.broadcast %cst_9 : f32 to vector<128x128xf32>
      %c0_10 = arith.constant 0 : index
      %c0_11 = arith.constant 0 : index
      %13 = vector.load %arg9[%c0_10, %c0_11] : memref<128x128xf32, #tpu.memory_space<vmem>>, vector<128x128xf32>
      tpu.vector_store %arg9[%c0_10, %c0_11], %12 {strides = array<i32>} : memref<128x128xf32, #tpu.memory_space<vmem>>, vector<128x128xf32>,
    } else {
    }
    %c0 = arith.constant 0 : index
    %c0_1 = arith.constant 0 : index
    %3 = vector.load %arg9[%c0, %c0_1] : memref<128x128xf32, #tpu.memory_space<vmem>>, vector<128x128xf32>
    %c0_2 = arith.constant 0 : index
    %c0_3 = arith.constant 0 : index
    %4 = vector.load %arg3[%c0_2, %c0_3] : memref<128x128xbf16, #tpu.memory_space<vmem>>, vector<128x128xbf16>
    %c0_4 = arith.constant 0 : index
    %c0_5 = arith.constant 0 : index
    %5 = vector.load %arg4[%c0_4, %c0_5] : memref<128x128xbf16, #tpu.memory_space<vmem>>, vector<128x128xbf16>
    %cst = arith.constant dense<0.000000e+00> : vector<128x128xf32>
    %6 = tpu.matmul %4, %5, %cst {dimension_numbers = #tpu.dot_dimension_numbers<[1], [0], [0], [1], [0, 0, 1, 1], [], []>} : vector<128x128xbf16>, vector<128x128xbf16>, vector<128x128xf32> -> vector<128x128xf32>
    %7 = arith.addf %3, %6 : vector<128x128xf32>
    %c0_6 = arith.constant 0 : index
    %c0_7 = arith.constant 0 : index
    %8 = vector.load %arg9[%c0_6, %c0_7] : memref<128x128xf32, #tpu.memory_space<vmem>>, vector<128x128xf32>
    tpu.vector_store %arg9[%c0_6, %c0_7], %7 {strides = array<i32>} : memref<128x128xf32, #tpu.memory_space<vmem>>, vector<128x128xf32>,
    %c4_i32 = arith.constant 4 : i32
    %9 = arith.cmpi eq, %arg2, %c4_i32 : i32
    %10 = arith.extui %9 : i1 to i32
    %c0_i32_8 = arith.constant 0 : i32
    %11 = arith.cmpi ne, %10, %c0_i32_8 : i32
    scf.if %11 {
      %c0_9 = arith.constant 0 : index
      %c0_10 = arith.constant 0 : index
      %12 = vector.load %arg9[%c0_9, %c0_10] : memref<128x128xf32, #tpu.memory_space<vmem>>, vector<128x128xf32>
      %c0_11 = arith.constant 0 : index
      %c0_12 = arith.constant 0 : index
      %13 = vector.load %arg5[%c0_11, %c0_12] : memref<1x128xf32, #tpu.memory_space<vmem>>, vector<1x128xf32>
      %14 = vector.broadcast %13 : vector<1x128xf32> to vector<128x128xf32>
      %15 = arith.mulf %12, %14 : vector<128x128xf32>
      %c0_13 = arith.constant 0 : index
      %c0_14 = arith.constant 0 : index
      %16 = vector.load %arg6[%c0_13, %c0_14] : memref<1x128xf32, #tpu.memory_space<vmem>>, vector<1x128xf32>
      %17 = vector.broadcast %16 : vector<1x128xf32> to vector<128x128xf32>
      %18 = arith.addf %15, %17 : vector<128x128xf32>
      %c0_15 = arith.constant 0 : index
      %c0_16 = arith.constant 0 : index
      %19 = vector.load %arg7[%c0_15, %c0_16] : memref<128x128xf32, #tpu.memory_space<vmem>>, vector<128x128xf32>
      %20 = arith.addf %18, %19 : vector<128x128xf32>
      %cst_17 = arith.constant 0.000000e+00 : f32
      %21 = vector.broadcast %cst_17 : f32 to vector<128x128xf32>
      %22 = arith.maximumf %20, %21 : vector<128x128xf32>
      %c0_18 = arith.constant 0 : index
      %c0_19 = arith.constant 0 : index
      %23 = vector.load %arg8[%c0_18, %c0_19] : memref<128x128xf32, #tpu.memory_space<vmem>>, vector<128x128xf32>
      tpu.vector_store %arg8[%c0_18, %c0_19], %22 {strides = array<i32>} : memref<128x128xf32, #tpu.memory_space<vmem>>, vector<128x128xf32>,
    } else {
    }
    return
  }
  func.func @transform_0(%arg0: i32, %arg1: i32, %arg2: i32) -> (i32, i32) {
    %c0_i32 = arith.constant 0 : i32
    return %arg0, %arg2 : i32, i32
  }
  func.func @transform_1(%arg0: i32, %arg1: i32, %arg2: i32) -> (i32, i32) {
    %c0_i32 = arith.constant 0 : i32
    return %arg2, %arg1 : i32, i32
  }
  func.func @transform_2(%arg0: i32, %arg1: i32, %arg2: i32) -> (i32, i32) {
    %c0_i32 = arith.constant 0 : i32
    %c0_i32_0 = arith.constant 0 : i32
    return %c0_i32, %arg1 : i32, i32
  }
  func.func @transform_3(%arg0: i32, %arg1: i32, %arg2: i32) -> (i32, i32) {
    %c0_i32 = arith.constant 0 : i32
    %c0_i32_0 = arith.constant 0 : i32
    return %c0_i32, %arg1 : i32, i32
  }
  func.func @transform_4(%arg0: i32, %arg1: i32, %arg2: i32) -> (i32, i32) {
    %c0_i32 = arith.constant 0 : i32
    return %arg0, %arg1 : i32, i32
  }
  func.func @transform_5(%arg0: i32, %arg1: i32, %arg2: i32) -> (i32, i32) {
    %c0_i32 = arith.constant 0 : i32
    return %arg0, %arg1 : i32, i32
  }
}

</mosaic_0001>

<bundles_post_ra>
// kernel: _lambda_.4
= control target key start
LH: loop header
LB: loop body
LE: loop exit
PB: predicated region body
PF: predicated region fallthrough
CT: control target
= control target key end

     0   :  { %s592_s1 = inlined_call_operand.vmem [shape: bf16[128,128], index: 1, kind: input, shape index: {}]   ;;  %s593_s2 = inlined_call_operand.vmem [shape: f32[1,128], index: 2, kind: input, shape index: {}]   ;;  %s594_s3 = inlined_call_operand.vmem [shape: f32[1,128], index: 3, kind: input, shape index: {}]   ;;  %s595_s0 = inlined_call_operand.vmem [shape: bf16[128,128], index: 0, kind: input, shape index: {}]   ;;  %s596_s4 = inlined_call_operand.vmem [shape: f32[128,128], index: 4, kind: output, shape index: {}]  }
   0x1   :  { %v420_v0 = vld [vmem:[%s592_s1 + $0x38] sm:$0xff]  ;;  %v419_v1 = vld [vmem:[%s592_s1 + $0x30] sm:$0xff]  ;;  %v418_v2 = vld [vmem:[%s592_s1 + $0x28] sm:$0xff] }
   0x2   :  { %181 = vmatpush.bf16.msra.mxu0 %v420_v0  ;;  %421 = vmatpush.bf16.msra.mxu1 %v420_v0  ;;  %v417_v3 = vld [vmem:[%s592_s1 + $0x20] sm:$0xff]  ;;  %v416_v4 = vld [vmem:[%s592_s1 + $0x18] sm:$0xff]  ;;  %v415_v5 = vld [vmem:[%s592_s1 + $0x10] sm:$0xff] }
   0x3   :  { %422 = vmatpush.bf16.msra.mxu2 %v420_v0  ;;  %423 = vmatpush.bf16.msra.mxu3 %v420_v0  ;;  %v414_v6 = vld [vmem:[%s592_s1 + $0x8] sm:$0xff]  ;;  %v413_v7 = vld [vmem:[%s592_s1] sm:$0xff]  ;;  %v407_v9 = vld [vmem:[%s595_s0 + $0x10] sm:$0xff] }
   0x4   :  { %v405_v8 = vld [vmem:[%s595_s0] sm:$0xff]  ;;  %v411_v11 = vld [vmem:[%s595_s0 + $0x30] sm:$0xff]  ;;  %v406_v12 = vld [vmem:[%s595_s0 + $0x8] sm:$0xff] }
   0x5   :  { %v409_v10 = vld [vmem:[%s595_s0 + $0x20] sm:$0xff]  ;;  %v408_v13 = vld [vmem:[%s595_s0 + $0x18] sm:$0xff]  ;;  %v410_v14 = vld [vmem:[%s595_s0 + $0x28] sm:$0xff] }
   0x6   :  { %182 = vmatpush.bf16.msra.mxu0 %v419_v1  ;;  %424 = vmatpush.bf16.msra.mxu1 %v419_v1  ;;  %v412_v15 = vld [vmem:[%s595_s0 + $0x38] sm:$0xff]  ;;  %v445_v16 = vld [vmem:[%s593_s2] ss:$0 sm:$0xff] }
   0x7   :  { %425 = vmatpush.bf16.msra.mxu2 %v419_v1  ;;  %426 = vmatpush.bf16.msra.mxu3 %v419_v1  ;;  %v526_v17 = vld [vmem:[%s594_s3] ss:$0 sm:$0xff] }
   0xa   :  { %183 = vmatpush.bf16.msra.mxu0 %v418_v2  ;;  %427 = vmatpush.bf16.msra.mxu1 %v418_v2 }
   0xb   :  { %428 = vmatpush.bf16.msra.mxu2 %v418_v2  ;;  %429 = vmatpush.bf16.msra.mxu3 %v418_v2 }
   0xe   :  { %184 = vmatpush.bf16.msra.mxu0 %v417_v3  ;;  %430 = vmatpush.bf16.msra.mxu1 %v417_v3 }
   0xf   :  { %431 = vmatpush.bf16.msra.mxu2 %v417_v3  ;;  %432 = vmatpush.bf16.msra.mxu3 %v417_v3 }
  0x12   :  { %185 = vmatpush.bf16.msra.mxu0 %v416_v4  ;;  %433 = vmatpush.bf16.msra.mxu1 %v416_v4 }
  0x13   :  { %434 = vmatpush.bf16.msra.mxu2 %v416_v4  ;;  %435 = vmatpush.bf16.msra.mxu3 %v416_v4 }
  0x16   :  { %186 = vmatpush.bf16.msra.mxu0 %v415_v5  ;;  %436 = vmatpush.bf16.msra.mxu1 %v415_v5 }
  0x17   :  { %437 = vmatpush.bf16.msra.mxu2 %v415_v5  ;;  %438 = vmatpush.bf16.msra.mxu3 %v415_v5 }
  0x1a   :  { %187 = vmatpush.bf16.msra.mxu0 %v414_v6  ;;  %439 = vmatpush.bf16.msra.mxu1 %v414_v6 }
  0x1b   :  { %440 = vmatpush.bf16.msra.mxu2 %v414_v6  ;;  %441 = vmatpush.bf16.msra.mxu3 %v414_v6 }
  0x1e   :  { %188 = vmatpush.bf16.msra.mxu0 %v413_v7  ;;  %442 = vmatpush.bf16.msra.mxu1 %v413_v7 }
  0x1f   :  { %443 = vmatpush.bf16.msra.mxu2 %v413_v7  ;;  %444 = vmatpush.bf16.msra.mxu3 %v413_v7 }
  0x21   :  { %189 = vmatmul.bf16.vlgmr.msra.gmra.mxu0 %v405_v8  ;;  %199 = vmatmul.bf16.vlgmr.msra.gmra.mxu1 %v407_v9 }
  0x22   :  { %209 = vmatmul.bf16.vlgmr.msra.gmra.mxu2 %v409_v10  ;;  %219 = vmatmul.bf16.vlgmr.msra.gmra.mxu3 %v411_v11 }
  0x31   :  { %194 = vmatmul.bf16.gmra.mxu0 %v406_v12  ;;  %204 = vmatmul.bf16.gmra.mxu1 %v408_v13 }
  0x32   :  { %214 = vmatmul.bf16.gmra.mxu2 %v410_v14  ;;  %224 = vmatmul.bf16.gmra.mxu3 %v412_v15 }
  0x9e   :  { %v190_v18 = vpop.f32.mrf.mxu0  ;;  %v200_v19 = vpop.f32.mrf.mxu1 }
  0x9f   :  { %v285_v20 = vmul.f32 %v445_v16, %v190_v18  ;;  %v289_v21 = vmul.f32 %v445_v16, %v200_v19 }
  0xa1   :  { %v305_v22 = vadd.f32 %v526_v17, %v285_v20  ;;  %v309_v23 = vadd.f32 %v526_v17, %v289_v21 }
  0xa3   :  { %321 = vst [vmem:[%s596_s4] sm:$0xff] %v305_v22 }
  0xa4   :  { %325 = vst [vmem:[%s596_s4 + $0x20] sm:$0xff] %v309_v23 }
  0xa5   :  { %v210_v24 = vpop.f32.mrf.mxu2  ;;  %v220_v25 = vpop.f32.mrf.mxu3 }
  0xa6   :  { %v293_v26 = vmul.f32 %v445_v16, %v210_v24  ;;  %v297_v27 = vmul.f32 %v445_v16, %v220_v25  ;;  %v192_v28 = vpop.f32.mrf.mxu0  ;;  %v202_v29 = vpop.f32.mrf.mxu1 }
  0xa7   :  { %v286_v30 = vmul.f32 %v445_v16, %v192_v28  ;;  %v290_v31 = vmul.f32 %v445_v16, %v202_v29 }
  0xa8   :  { %v313_v32 = vadd.f32 %v526_v17, %v293_v26  ;;  %v317_v33 = vadd.f32 %v526_v17, %v297_v27 }
  0xa9   :  { %v306_v34 = vadd.f32 %v526_v17, %v286_v30  ;;  %v310_v35 = vadd.f32 %v526_v17, %v290_v31 }
  0xaa   :  { %329 = vst [vmem:[%s596_s4 + $0x40] sm:$0xff] %v313_v32 }
  0xab   :  { %333 = vst [vmem:[%s596_s4 + $0x60] sm:$0xff] %v317_v33 }
  0xac   :  { %322 = vst [vmem:[%s596_s4 + $0x8] sm:$0xff] %v306_v34 }
  0xad   :  { %326 = vst [vmem:[%s596_s4 + $0x28] sm:$0xff] %v310_v35  ;;  %v212_v36 = vpop.f32.mrf.mxu2  ;;  %v222_v37 = vpop.f32.mrf.mxu3 }
  0xae   :  { %v294_v38 = vmul.f32 %v445_v16, %v212_v36  ;;  %v298_v39 = vmul.f32 %v445_v16, %v222_v37  ;;  %v195_v40 = vpop.f32.mrf.mxu0  ;;  %v205_v41 = vpop.f32.mrf.mxu1 }
  0xaf   :  { %v287_v42 = vmul.f32 %v445_v16, %v195_v40  ;;  %v291_v43 = vmul.f32 %v445_v16, %v205_v41 }
  0xb0   :  { %v314_v44 = vadd.f32 %v526_v17, %v294_v38  ;;  %v318_v45 = vadd.f32 %v526_v17, %v298_v39 }
  0xb1   :  { %v307_v46 = vadd.f32 %v526_v17, %v287_v42  ;;  %v311_v47 = vadd.f32 %v526_v17, %v291_v43 }
  0xb2   :  { %330 = vst [vmem:[%s596_s4 + $0x48] sm:$0xff] %v314_v44 }
  0xb3   :  { %334 = vst [vmem:[%s596_s4 + $0x68] sm:$0xff] %v318_v45 }
  0xb4   :  { %323 = vst [vmem:[%s596_s4 + $0x10] sm:$0xff] %v307_v46 }
  0xb5   :  { %327 = vst [vmem:[%s596_s4 + $0x30] sm:$0xff] %v311_v47  ;;  %v215_v48 = vpop.f32.mrf.mxu2  ;;  %v225_v49 = vpop.f32.mrf.mxu3 }
  0xb6   :  { %v295_v50 = vmul.f32 %v445_v16, %v215_v48  ;;  %v299_v51 = vmul.f32 %v445_v16, %v225_v49  ;;  %v197_v52 = vpop.f32.mrf.mxu0  ;;  %v207_v53 = vpop.f32.mrf.mxu1 }
  0xb7   :  { %v288_v54 = vmul.f32 %v445_v16, %v197_v52  ;;  %v292_v55 = vmul.f32 %v445_v16, %v207_v53 }
  0xb8   :  { %v315_v56 = vadd.f32 %v526_v17, %v295_v50  ;;  %v319_v57 = vadd.f32 %v526_v17, %v299_v51 }
  0xb9   :  { %v308_v58 = vadd.f32 %v526_v17, %v288_v54  ;;  %v312_v59 = vadd.f32 %v526_v17, %v292_v55 }
  0xba   :  { %331 = vst [vmem:[%s596_s4 + $0x50] sm:$0xff] %v315_v56 }
  0xbb   :  { %335 = vst [vmem:[%s596_s4 + $0x70] sm:$0xff] %v319_v57 }
  0xbc   :  { %324 = vst [vmem:[%s596_s4 + $0x18] sm:$0xff] %v308_v58 }
  0xbd   :  { %328 = vst [vmem:[%s596_s4 + $0x38] sm:$0xff] %v312_v59  ;;  %v217_v60 = vpop.f32.mrf.mxu2  ;;  %v227_v61 = vpop.f32.mrf.mxu3 }
  0xbe   :  { %v296_v62 = vmul.f32 %v445_v16, %v217_v60  ;;  %v300_v63 = vmul.f32 %v445_v16, %v227_v61 }
  0xc0   :  { %v316_v0 = vadd.f32 %v526_v17, %v296_v62  ;;  %v320_v1 = vadd.f32 %v526_v17, %v300_v63 }
  0xc2   :  { %332 = vst [vmem:[%s596_s4 + $0x58] sm:$0xff] %v316_v0 }
  0xc3   :  { %336 = vst [vmem:[%s596_s4 + $0x78] sm:$0xff] %v320_v1 }

// kernel: _lambda_.3
= control target key start
LH: loop header
LB: loop body
LE: loop exit
PB: predicated region body
PF: predicated region fallthrough
CT: control target
= control target key end

     0   :  { %s1332_s1 = inlined_call_operand.vmem [shape: bf16[384,128], index: 1, kind: input, shape index: {}]   ;;  %s1333_s0 = inlined_call_operand.vmem [shape: bf16[128,384], index: 0, kind: input, shape index: {}]   ;;  %s1334_s2 = inlined_call_operand.vmem [shape: f32[1,128], index: 2, kind: input, shape index: {}]   ;;  %s1335_s3 = inlined_call_operand.vmem [shape: f32[1,128], index: 3, kind: input, shape index: {}]   ;;  %s1336_s4 = inlined_call_operand.vmem [shape: f32[128,128], index: 4, kind: output, shape index: {}]  }
   0x1   :  { %v902_v0 = vld [vmem:[%s1332_s1 + $0x38] sm:$0xff]  ;;  %v901_v3 = vld [vmem:[%s1332_s1 + $0x30] sm:$0xff]  ;;  %v900_v6 = vld [vmem:[%s1332_s1 + $0x28] sm:$0xff] }
   0x2   :  { %v976_v1 = vld [vmem:[%s1332_s1 + $0x78] sm:$0xff]  ;;  %405 = vmatpush.bf16.msra.mxu0 %v902_v0  ;;  %919 = vmatpush.bf16.msra.mxu3 %v902_v0  ;;  %v991_v4 = vld [vmem:[%s1332_s1 + $0x70] sm:$0xff]  ;;  %v908_v7 = vld [vmem:[%s1332_s1 + $0x68] sm:$0xff] }
   0x3   :  { %v981_v2 = vld [vmem:[%s1332_s1 + $0xb8] sm:$0xff]  ;;  %454 = vmatpush.bf16.msra.mxu1 %v976_v1  ;;  %v996_v5 = vld [vmem:[%s1332_s1 + $0xb0] sm:$0xff]  ;;  %v1009_v8 = vld [vmem:[%s1332_s1 + $0xa8] sm:$0xff] }
   0x4   :  { %503 = vmatpush.bf16.msra.mxu2 %v981_v2  ;;  %v899_v9 = vld [vmem:[%s1332_s1 + $0x20] sm:$0xff]  ;;  %v898_v12 = vld [vmem:[%s1332_s1 + $0x18] sm:$0xff]  ;;  %v897_v15 = vld [vmem:[%s1332_s1 + $0x10] sm:$0xff] }
   0x5   :  { %v1018_v10 = vld [vmem:[%s1332_s1 + $0x60] sm:$0xff]  ;;  %v906_v13 = vld [vmem:[%s1332_s1 + $0x58] sm:$0xff]  ;;  %v905_v16 = vld [vmem:[%s1332_s1 + $0x50] sm:$0xff] }
   0x6   :  { %406 = vmatpush.bf16.msra.mxu0 %v901_v3  ;;  %920 = vmatpush.bf16.msra.mxu3 %v901_v3  ;;  %v1023_v11 = vld [vmem:[%s1332_s1 + $0xa0] sm:$0xff]  ;;  %v1036_v14 = vld [vmem:[%s1332_s1 + $0x98] sm:$0xff]  ;;  %v1048_v17 = vld [vmem:[%s1332_s1 + $0x90] sm:$0xff] }
   0x7   :  { %455 = vmatpush.bf16.msra.mxu1 %v991_v4  ;;  %v896_v18 = vld [vmem:[%s1332_s1 + $0x8] sm:$0xff]  ;;  %v895_v21 = vld [vmem:[%s1332_s1] sm:$0xff]  ;;  %v753_v26 = vld [vmem:[%s1333_s0 + $0x90] sm:$0xf] }
   0x8   :  { %504 = vmatpush.bf16.msra.mxu2 %v996_v5  ;;  %v904_v19 = vld [vmem:[%s1332_s1 + $0x48] sm:$0xff]  ;;  %v903_v22 = vld [vmem:[%s1332_s1 + $0x40] sm:$0xff]  ;;  %v890_v27 = vld [vmem:[%s1333_s0 + $0x98] sm:$0xf0] }
   0x9   :  { %v1060_v20 = vld [vmem:[%s1332_s1 + $0x88] sm:$0xff]  ;;  %v1071_v23 = vld [vmem:[%s1332_s1 + $0x80] sm:$0xff]  ;;  %v683_v29 = vld [vmem:[%s1333_s0 + $0xc] sm:$0xf0]  ;;  %v754_v33 = vor.u32 %v890_v27, %v753_v26 }
   0xa   :  { %407 = vmatpush.bf16.msra.mxu0 %v900_v6  ;;  %921 = vmatpush.bf16.msra.mxu3 %v900_v6  ;;  %v681_v24 = vld [vmem:[%s1333_s0] sm:$0xf]  ;;  %v872_v25 = vld [vmem:[%s1333_s0 + $0x8] sm:$0xf0]  ;;  %v871_v28 = vld [vmem:[%s1333_s0 + $0x4] sm:$0xf] }
   0xb   :  { %456 = vmatpush.bf16.msra.mxu1 %v908_v7  ;;  %v689_v30 = vld [vmem:[%s1333_s0 + $0x8] sm:$0xf]  ;;  %v873_v31 = vld [vmem:[%s1333_s0 + $0x10] sm:$0xf0]  ;;  %v682_v32 = vor.u32 %v872_v25, %v681_v24  ;;  %v686_v34 = vor.u32 %v871_v28, %v683_v29  ;;  %v693_v36 = vld [vmem:[%s1333_s0 + $0x18] sm:$0xf] }
   0xc   :  { %505 = vmatpush.bf16.msra.mxu2 %v1009_v8  ;;  %v690_v35 = vor.u32 %v873_v31, %v689_v30  ;;  %v875_v37 = vld [vmem:[%s1333_s0 + $0x20] sm:$0xf0]  ;;  %v765_v38 = vld [vmem:[%s1333_s0 + $0xa8] sm:$0xf]  ;;  %v893_v39 = vld [vmem:[%s1333_s0 + $0xb0] sm:$0xf0] }
   0xd   :  { %v874_v40 = vld [vmem:[%s1333_s0 + $0x1c] sm:$0xf]  ;;  %v695_v41 = vld [vmem:[%s1333_s0 + $0x24] sm:$0xf0]  ;;  %v701_v42 = vld [vmem:[%s1333_s0 + $0x20] sm:$0xf]  ;;  %v694_v44 = vor.u32 %v875_v37, %v693_v36  ;;  %v766_v45 = vor.u32 %v893_v39, %v765_v38 }
   0xe   :  { %408 = vmatpush.bf16.msra.mxu0 %v899_v9  ;;  %922 = vmatpush.bf16.msra.mxu3 %v899_v9  ;;  %v876_v43 = vld [vmem:[%s1333_s0 + $0x28] sm:$0xf0]  ;;  %v698_v46 = vor.u32 %v874_v40, %v695_v41  ;;  %v705_v48 = vld [vmem:[%s1333_s0 + $0x30] sm:$0xf]  ;;  %v878_v49 = vld [vmem:[%s1333_s0 + $0x38] sm:$0xf0] }
   0xf   :  { %457 = vmatpush.bf16.msra.mxu1 %v1018_v10  ;;  %v702_v47 = vor.u32 %v876_v43, %v701_v42  ;;  %v877_v50 = vld [vmem:[%s1333_s0 + $0x34] sm:$0xf]  ;;  %v755_v52 = vld [vmem:[%s1333_s0 + $0x9c] sm:$0xf0]  ;;  %v713_v54 = vld [vmem:[%s1333_s0 + $0x38] sm:$0xf]  ;;  %v706_v56 = vor.u32 %v878_v49, %v705_v48 }
  0x10   :  { %506 = vmatpush.bf16.msra.mxu2 %v1023_v11  ;;  %v889_v51 = vld [vmem:[%s1333_s0 + $0x94] sm:$0xf]  ;;  %v707_v53 = vld [vmem:[%s1333_s0 + $0x3c] sm:$0xf0]  ;;  %v879_v55 = vld [vmem:[%s1333_s0 + $0x40] sm:$0xf0] }
  0x11   :  { %v758_v57 = vor.u32 %v889_v51, %v755_v52  ;;  %v710_v58 = vor.u32 %v877_v50, %v707_v53  ;;  %v714_v59 = vor.u32 %v879_v55, %v713_v54  ;;  %v717_v60 = vld [vmem:[%s1333_s0 + $0x48] sm:$0xf]  ;;  %v881_v61 = vld [vmem:[%s1333_s0 + $0x50] sm:$0xf0]  ;;  %v880_v62 = vld [vmem:[%s1333_s0 + $0x4c] sm:$0xf] }
  0x12   :  { %409 = vmatpush.bf16.msra.mxu0 %v898_v12  ;;  %923 = vmatpush.bf16.msra.mxu3 %v898_v12  ;;  %v892_v63 = vld [vmem:[%s1333_s0 + $0xac] sm:$0xf]  ;;  %v767_v0 = vld [vmem:[%s1333_s0 + $0xb4] sm:$0xf0]  ;;  %v882_v3 = vld [vmem:[%s1333_s0 + $0x58] sm:$0xf0] }
  0x13   :  { %458 = vmatpush.bf16.msra.mxu1 %v906_v13  ;;  %v884_v9 = vld [vmem:[%s1333_s0 + $0x68] sm:$0xf0]  ;;  %v891_v12 = vld [vmem:[%s1333_s0 + $0xa0] sm:$0xf0]  ;;  %v894_v24 = vld [vmem:[%s1333_s0 + $0xb8] sm:$0xf0] }
  0x14   :  { %507 = vmatpush.bf16.msra.mxu2 %v1036_v14  ;;  %v743_v25 = vld [vmem:[%s1333_s0 + $0x84] sm:$0xf0]  ;;  %v749_v26 = vld [vmem:[%s1333_s0 + $0x80] sm:$0xf]  ;;  %v888_v27 = vld [vmem:[%s1333_s0 + $0x88] sm:$0xf0] }
  0x15   :  { %v750_v31 = vor.u32 %v888_v27, %v749_v26  ;;  %v1235_v36 = vld [vmem:[%s1334_s2] ss:$0 sm:$0xff] }
  0x16   :  { %410 = vmatpush.bf16.msra.mxu0 %v897_v15  ;;  %924 = vmatpush.bf16.msra.mxu3 %v897_v15  ;;  %v885_v15 = vld [vmem:[%s1333_s0 + $0x70] sm:$0xf0]  ;;  %v1240_v39 = vld [vmem:[%s1335_s3] ss:$0 sm:$0xff] }
  0x17   :  { %459 = vmatpush.bf16.msra.mxu1 %v905_v16 }
  0x18   :  { %508 = vmatpush.bf16.msra.mxu2 %v1048_v17 }
  0x1a   :  { %411 = vmatpush.bf16.msra.mxu0 %v896_v18  ;;  %925 = vmatpush.bf16.msra.mxu3 %v896_v18 }
  0x1b   :  { %460 = vmatpush.bf16.msra.mxu1 %v904_v19 }
  0x1c   :  { %509 = vmatpush.bf16.msra.mxu2 %v1060_v20 }
  0x1e   :  { %412 = vmatpush.bf16.msra.mxu0 %v895_v21  ;;  %926 = vmatpush.bf16.msra.mxu3 %v895_v21  ;;  %v887_v21 = vld [vmem:[%s1333_s0 + $0x80] sm:$0xf0] }
  0x1f   :  { %461 = vmatpush.bf16.msra.mxu1 %v903_v22 }
  0x20   :  { %510 = vmatpush.bf16.msra.mxu2 %v1071_v23 }
  0x21   :  { %413 = vmatmul.bf16.vlgmr.msra.gmra.mxu0 %v682_v32  ;;  %443 = vmatmul.bf16.vlgmr.msra.gmra.mxu3 %v754_v33 }
  0x22   :  { %927 = vmatpush.bf16.msrb.mxu3 %v976_v1  ;;  %462 = vmatmul.bf16.vlgmr.msra.gmra.mxu1 %v686_v34  ;;  %v719_v1 = vld [vmem:[%s1333_s0 + $0x54] sm:$0xf0] }
  0x23   :  { %511 = vmatmul.bf16.vlgmr.msra.gmra.mxu2 %v690_v35  ;;  %v722_v6 = vor.u32 %v880_v62, %v719_v1 }
  0x26   :  { %928 = vmatpush.bf16.msrb.mxu3 %v991_v4  ;;  %v718_v4 = vor.u32 %v881_v61, %v717_v60 }
  0x2a   :  { %929 = vmatpush.bf16.msrb.mxu3 %v908_v7 }
  0x2e   :  { %930 = vmatpush.bf16.msrb.mxu3 %v1018_v10  ;;  %v883_v10 = vld [vmem:[%s1333_s0 + $0x64] sm:$0xf] }
  0x31   :  { %418 = vmatmul.bf16.gmra.mxu0 %v694_v44  ;;  %448 = vmatmul.bf16.gmra.mxu3 %v766_v45 }
  0x32   :  { %931 = vmatpush.bf16.msrb.mxu3 %v906_v13  ;;  %467 = vmatmul.bf16.gmra.mxu1 %v698_v46  ;;  %v731_v13 = vld [vmem:[%s1333_s0 + $0x6c] sm:$0xf0] }
  0x33   :  { %516 = vmatmul.bf16.gmra.mxu2 %v702_v47  ;;  %v734_v18 = vor.u32 %v883_v10, %v731_v13 }
  0x36   :  { %932 = vmatpush.bf16.msrb.mxu3 %v905_v16 }
  0x3a   :  { %933 = vmatpush.bf16.msrb.mxu3 %v904_v19 }
  0x3e   :  { %934 = vmatpush.bf16.msrb.mxu3 %v903_v22  ;;  %v886_v22 = vld [vmem:[%s1333_s0 + $0x7c] sm:$0xf] }
  0x3f   :  { %v746_v30 = vor.u32 %v886_v22, %v743_v25 }
  0x41   :  { %423 = vmatmul.bf16.gmra.mxu0 %v706_v56  ;;  %492 = vmatmul.bf16.vlgmr.msrb.gmra.mxu3 %v758_v57 }
  0x42   :  { %935 = vmatpush.bf16.msra.mxu3 %v981_v2  ;;  %472 = vmatmul.bf16.gmra.mxu1 %v710_v58  ;;  %v725_v2 = vld [vmem:[%s1333_s0 + $0x50] sm:$0xf] }
  0x43   :  { %521 = vmatmul.bf16.gmra.mxu2 %v714_v59  ;;  %v726_v7 = vor.u32 %v882_v3, %v725_v2 }
  0x46   :  { %936 = vmatpush.bf16.msra.mxu3 %v996_v5  ;;  %v770_v5 = vor.u32 %v892_v63, %v767_v0 }
  0x4a   :  { %937 = vmatpush.bf16.msra.mxu3 %v1009_v8  ;;  %v729_v8 = vld [vmem:[%s1333_s0 + $0x60] sm:$0xf] }
  0x4b   :  { %v730_v16 = vor.u32 %v884_v9, %v729_v8 }
  0x4e   :  { %938 = vmatpush.bf16.msra.mxu3 %v1023_v11  ;;  %v761_v11 = vld [vmem:[%s1333_s0 + $0x98] sm:$0xf] }
  0x51   :  { %428 = vmatmul.bf16.gmra.mxu0 %v718_v4  ;;  %497 = vmatmul.bf16.gmra.mxu3 %v770_v5 }
  0x52   :  { %939 = vmatpush.bf16.msra.mxu3 %v1036_v14  ;;  %477 = vmatmul.bf16.gmra.mxu1 %v722_v6  ;;  %v737_v14 = vld [vmem:[%s1333_s0 + $0x68] sm:$0xf] }
  0x53   :  { %526 = vmatmul.bf16.gmra.mxu2 %v726_v7  ;;  %v738_v19 = vor.u32 %v885_v15, %v737_v14 }
  0x56   :  { %940 = vmatpush.bf16.msra.mxu3 %v1048_v17  ;;  %v762_v17 = vor.u32 %v891_v12, %v761_v11 }
  0x5a   :  { %941 = vmatpush.bf16.msra.mxu3 %v1060_v20  ;;  %v741_v20 = vld [vmem:[%s1333_s0 + $0x78] sm:$0xf] }
  0x5b   :  { %v742_v28 = vor.u32 %v887_v21, %v741_v20 }
  0x5e   :  { %942 = vmatpush.bf16.msra.mxu3 %v1071_v23  ;;  %v773_v23 = vld [vmem:[%s1333_s0 + $0xb0] sm:$0xf] }
  0x5f   :  { %v774_v29 = vor.u32 %v894_v24, %v773_v23 }
  0x61   :  { %433 = vmatmul.bf16.gmra.mxu0 %v730_v16  ;;  %541 = vmatmul.bf16.vlgmr.msra.gmra.mxu3 %v762_v17 }
  0x62   :  { %482 = vmatmul.bf16.gmra.mxu1 %v734_v18 }
  0x63   :  { %531 = vmatmul.bf16.gmra.mxu2 %v738_v19 }
  0x71   :  { %438 = vmatmul.bf16.gmra.mxu0 %v742_v28  ;;  %546 = vmatmul.bf16.gmra.mxu3 %v774_v29 }
  0x72   :  { %487 = vmatmul.bf16.gmra.mxu1 %v746_v30 }
  0x73   :  { %536 = vmatmul.bf16.gmra.mxu2 %v750_v31 }
  0x9e   :  { %v414_v32 = vpop.f32.mrf.mxu0 }
  0x9f   :  { %v463_v33 = vpop.f32.mrf.mxu1 }
  0xa0   :  { %v464_v34 = vadd.f32 %v463_v33, %v414_v32 }
  0xa4   :  { %v1230_v35 = vpop.f32.mrf.mxu3 }
  0xa6   :  { %v512_v37 = vpop.f32.mrf.mxu2  ;;  %v416_v40 = vpop.f32.mrf.mxu0 }
  0xa7   :  { %v513_v38 = vadd.f32 %v512_v37, %v464_v34  ;;  %v465_v41 = vpop.f32.mrf.mxu1 }
  0xa8   :  { %v466_v45 = vadd.f32 %v465_v41, %v416_v40 }
  0xa9   :  { %v607_v42 = vmul.f32 %v1235_v36, %v513_v38 }
  0xab   :  { %v627_v43 = vadd.f32 %v1240_v39, %v607_v42 }
  0xac   :  { %v1244_v46 = vpop.f32.mrf.mxu3 }
  0xad   :  { %v643_v44 = vmax.f32 %v627_v43, 0.0 }
  0xae   :  { %v514_v47 = vpop.f32.mrf.mxu2  ;;  %v419_v49 = vpop.f32.mrf.mxu0 }
  0xaf   :  { %659 = vst [vmem:[%s1336_s4] sm:$0xff] %v643_v44  ;;  %v515_v48 = vadd.f32 %v514_v47, %v466_v45  ;;  %v468_v50 = vpop.f32.mrf.mxu1 }
  0xb0   :  { %v469_v53 = vadd.f32 %v468_v50, %v419_v49 }
  0xb1   :  { %v608_v51 = vmul.f32 %v1235_v36, %v515_v48 }
  0xb3   :  { %v628_v52 = vadd.f32 %v1240_v39, %v608_v51 }
  0xb4   :  { %v1251_v55 = vpop.f32.mrf.mxu3 }
  0xb5   :  { %v644_v54 = vmax.f32 %v628_v52, 0.0 }
  0xb6   :  { %v517_v56 = vpop.f32.mrf.mxu2  ;;  %v421_v58 = vpop.f32.mrf.mxu0 }
  0xb7   :  { %660 = vst [vmem:[%s1336_s4 + $0x8] sm:$0xff] %v644_v54  ;;  %v518_v57 = vadd.f32 %v517_v56, %v469_v53  ;;  %v470_v59 = vpop.f32.mrf.mxu1 }
  0xb8   :  { %v471_v63 = vadd.f32 %v470_v59, %v421_v58 }
  0xb9   :  { %v609_v60 = vmul.f32 %v1235_v36, %v518_v57 }
  0xbb   :  { %v629_v61 = vadd.f32 %v1240_v39, %v609_v60 }
  0xbc   :  { %v1258_v0 = vpop.f32.mrf.mxu3 }
  0xbd   :  { %v645_v62 = vmax.f32 %v629_v61, 0.0 }
  0xbe   :  { %v519_v1 = vpop.f32.mrf.mxu2  ;;  %v424_v3 = vpop.f32.mrf.mxu0 }
  0xbf   :  { %661 = vst [vmem:[%s1336_s4 + $0x10] sm:$0xff] %v645_v62  ;;  %v520_v2 = vadd.f32 %v519_v1, %v471_v63  ;;  %v473_v4 = vpop.f32.mrf.mxu1 }
  0xc0   :  { %v474_v7 = vadd.f32 %v473_v4, %v424_v3 }
  0xc1   :  { %v610_v5 = vmul.f32 %v1235_v36, %v520_v2 }
  0xc3   :  { %v630_v6 = vadd.f32 %v1240_v39, %v610_v5 }
  0xc4   :  { %v493_v9 = vpop.f32.mrf.mxu3 }
  0xc5   :  { %v646_v8 = vmax.f32 %v630_v6, 0.0  ;;  %v494_v48 = vadd.f32 %v493_v9, %v1230_v35 }
  0xc6   :  { %v522_v10 = vpop.f32.mrf.mxu2  ;;  %v426_v12 = vpop.f32.mrf.mxu0 }
  0xc7   :  { %662 = vst [vmem:[%s1336_s4 + $0x18] sm:$0xff] %v646_v8  ;;  %v523_v11 = vadd.f32 %v522_v10, %v474_v7  ;;  %v475_v13 = vpop.f32.mrf.mxu1 }
  0xc8   :  { %v476_v17 = vadd.f32 %v475_v13, %v426_v12 }
  0xc9   :  { %v611_v14 = vmul.f32 %v1235_v36, %v523_v11 }
  0xcb   :  { %v631_v15 = vadd.f32 %v1240_v39, %v611_v14 }
  0xcc   :  { %v495_v18 = vpop.f32.mrf.mxu3 }
  0xcd   :  { %v647_v16 = vmax.f32 %v631_v15, 0.0  ;;  %v496_v35 = vadd.f32 %v495_v18, %v1244_v46 }
  0xce   :  { %v524_v19 = vpop.f32.mrf.mxu2  ;;  %v429_v21 = vpop.f32.mrf.mxu0 }
  0xcf   :  { %663 = vst [vmem:[%s1336_s4 + $0x20] sm:$0xff] %v647_v16  ;;  %v525_v20 = vadd.f32 %v524_v19, %v476_v17  ;;  %v478_v22 = vpop.f32.mrf.mxu1 }
  0xd0   :  { %v479_v25 = vadd.f32 %v478_v22, %v429_v21 }
  0xd1   :  { %v612_v23 = vmul.f32 %v1235_v36, %v525_v20 }
  0xd3   :  { %v632_v24 = vadd.f32 %v1240_v39, %v612_v23 }
  0xd4   :  { %v498_v27 = vpop.f32.mrf.mxu3 }
  0xd5   :  { %v648_v26 = vmax.f32 %v632_v24, 0.0  ;;  %v499_v11 = vadd.f32 %v498_v27, %v1251_v55 }
  0xd6   :  { %v527_v28 = vpop.f32.mrf.mxu2  ;;  %v431_v30 = vpop.f32.mrf.mxu0 }
  0xd7   :  { %664 = vst [vmem:[%s1336_s4 + $0x28] sm:$0xff] %v648_v26  ;;  %v528_v29 = vadd.f32 %v527_v28, %v479_v25  ;;  %v480_v31 = vpop.f32.mrf.mxu1 }
  0xd8   :  { %v481_v37 = vadd.f32 %v480_v31, %v431_v30 }
  0xd9   :  { %v613_v32 = vmul.f32 %v1235_v36, %v528_v29 }
  0xdb   :  { %v633_v33 = vadd.f32 %v1240_v39, %v613_v32 }
  0xdc   :  { %v500_v38 = vpop.f32.mrf.mxu3 }
  0xdd   :  { %v649_v34 = vmax.f32 %v633_v33, 0.0  ;;  %v501_v23 = vadd.f32 %v500_v38, %v1258_v0 }
  0xde   :  { %v529_v40 = vpop.f32.mrf.mxu2  ;;  %v434_v42 = vpop.f32.mrf.mxu0 }
  0xdf   :  { %665 = vst [vmem:[%s1336_s4 + $0x30] sm:$0xff] %v649_v34  ;;  %v530_v41 = vadd.f32 %v529_v40, %v481_v37  ;;  %v483_v43 = vpop.f32.mrf.mxu1 }
  0xe0   :  { %v484_v47 = vadd.f32 %v483_v43, %v434_v42 }
  0xe1   :  { %v614_v44 = vmul.f32 %v1235_v36, %v530_v41 }
  0xe3   :  { %v634_v45 = vadd.f32 %v1240_v39, %v614_v44 }
  0xe4   :  { %v542_v50 = vpop.f32.mrf.mxu3 }
  0xe5   :  { %v650_v49 = vmax.f32 %v634_v45, 0.0  ;;  %v543_v52 = vadd.f32 %v542_v50, %v494_v48 }
  0xe6   :  { %v532_v51 = vpop.f32.mrf.mxu2  ;;  %v436_v54 = vpop.f32.mrf.mxu0 }
  0xe7   :  { %666 = vst [vmem:[%s1336_s4 + $0x38] sm:$0xff] %v650_v49  ;;  %v533_v53 = vadd.f32 %v532_v51, %v484_v47  ;;  %v619_v56 = vmul.f32 %v1235_v36, %v543_v52  ;;  %v485_v57 = vpop.f32.mrf.mxu1 }
  0xe8   :  { %v486_v63 = vadd.f32 %v485_v57, %v436_v54 }
  0xe9   :  { %v615_v58 = vmul.f32 %v1235_v36, %v533_v53  ;;  %v639_v59 = vadd.f32 %v1240_v39, %v619_v56 }
  0xeb   :  { %v635_v60 = vadd.f32 %v1240_v39, %v615_v58  ;;  %v655_v61 = vmax.f32 %v639_v59, 0.0 }
  0xec   :  { %v544_v1 = vpop.f32.mrf.mxu3 }
  0xed   :  { %v651_v62 = vmax.f32 %v635_v60, 0.0  ;;  %671 = vst [vmem:[%s1336_s4 + $0x60] sm:$0xff] %v655_v61  ;;  %v545_v3 = vadd.f32 %v544_v1, %v496_v35 }
  0xee   :  { %v534_v2 = vpop.f32.mrf.mxu2  ;;  %v439_v6 = vpop.f32.mrf.mxu0 }
  0xef   :  { %667 = vst [vmem:[%s1336_s4 + $0x40] sm:$0xff] %v651_v62  ;;  %v535_v4 = vadd.f32 %v534_v2, %v486_v63  ;;  %v620_v5 = vmul.f32 %v1235_v36, %v545_v3  ;;  %v488_v7 = vpop.f32.mrf.mxu1 }
  0xf0   :  { %v489_v10 = vadd.f32 %v488_v7, %v439_v6 }
  0xf1   :  { %v616_v46 = vmul.f32 %v1235_v36, %v535_v4  ;;  %v640_v8 = vadd.f32 %v1240_v39, %v620_v5 }
  0xf3   :  { %v636_v9 = vadd.f32 %v1240_v39, %v616_v46  ;;  %v656_v12 = vmax.f32 %v640_v8, 0.0 }
  0xf4   :  { %v547_v14 = vpop.f32.mrf.mxu3 }
  0xf5   :  { %v652_v13 = vmax.f32 %v636_v9, 0.0  ;;  %672 = vst [vmem:[%s1336_s4 + $0x68] sm:$0xff] %v656_v12  ;;  %v548_v16 = vadd.f32 %v547_v14, %v499_v11 }
  0xf6   :  { %v537_v15 = vpop.f32.mrf.mxu2  ;;  %v441_v20 = vpop.f32.mrf.mxu0 }
  0xf7   :  { %668 = vst [vmem:[%s1336_s4 + $0x48] sm:$0xff] %v652_v13  ;;  %v538_v17 = vadd.f32 %v537_v15, %v489_v10  ;;  %v621_v18 = vmul.f32 %v1235_v36, %v548_v16  ;;  %v490_v21 = vpop.f32.mrf.mxu1 }
  0xf8   :  { %v491_v26 = vadd.f32 %v490_v21, %v441_v20 }
  0xf9   :  { %v617_v19 = vmul.f32 %v1235_v36, %v538_v17  ;;  %v641_v55 = vadd.f32 %v1240_v39, %v621_v18 }
  0xfb   :  { %v637_v22 = vadd.f32 %v1240_v39, %v617_v19  ;;  %v657_v24 = vmax.f32 %v641_v55, 0.0 }
  0xfc   :  { %v549_v27 = vpop.f32.mrf.mxu3 }
  0xfd   :  { %v653_v25 = vmax.f32 %v637_v22, 0.0  ;;  %673 = vst [vmem:[%s1336_s4 + $0x70] sm:$0xff] %v657_v24  ;;  %v550_v29 = vadd.f32 %v549_v27, %v501_v23 }
  0xfe   :  { %v539_v28 = vpop.f32.mrf.mxu2 }
  0xff   :  { %669 = vst [vmem:[%s1336_s4 + $0x50] sm:$0xff] %v653_v25  ;;  %v540_v30 = vadd.f32 %v539_v28, %v491_v26  ;;  %v622_v31 = vmul.f32 %v1235_v36, %v550_v29 }
 0x101   :  { %v618_v32 = vmul.f32 %v1235_v36, %v540_v30  ;;  %v642_v0 = vadd.f32 %v1240_v39, %v622_v31 }
 0x103   :  { %v638_v33 = vadd.f32 %v1240_v39, %v618_v32  ;;  %v658_v34 = vmax.f32 %v642_v0, 0.0 }
 0x105   :  { %v654_v37 = vmax.f32 %v638_v33, 0.0  ;;  %674 = vst [vmem:[%s1336_s4 + $0x78] sm:$0xff] %v658_v34 }
 0x107   :  { %670 = vst [vmem:[%s1336_s4 + $0x58] sm:$0xff] %v654_v37 }

// kernel: _lambda_.5
= control target key start
LH: loop header
LB: loop body
LE: loop exit
PB: predicated region body
PF: predicated region fallthrough
CT: control target
= control target key end

     0   :  { %10 = vsyncpa [#allocation5], 0  ;;  %s1225_s18 = smov 0   ;;  %s1227_s19 = smov 0   ;;  %s1426_s0 = inlined_call_operand.vmem [shape: bf16[128,640], index: 0, kind: input, shape index: {}]   ;;  %s1427_s1 = inlined_call_operand.vmem [shape: bf16[640,128], index: 1, kind: input, shape index: {}]   ;;  %s1428_s2 = inlined_call_operand.vmem [shape: f32[1,128], index: 2, kind: input, shape index: {}]   ;;  %s1429_s3 = inlined_call_operand.vmem [shape: f32[1,128], index: 3, kind: input, shape index: {}]   ;;  %s1430_s4 = inlined_call_operand.vmem [shape: f32[128,128], index: 4, kind: input, shape index: {}]   ;;  %s1431_s5 = inlined_call_operand.hbm [shape: f32[128,128], index: 5, kind: output, shape index: {}]  }
   0x1   :  { %s1229_s20 = smov 0   ;;  %s1231_s21 = smov 0  }
   0x2   :  { %s1233_s22 = smov 0  }
   0x3 LB: > { %s945_s23 = sadd.s32 4294967295, %s1189_s22   ;;  %s28_s24 = sadd.s32 1, %s1185_s21  ;;  %s1189_s22 = sphi %s1233_s22, %s16_s22   ;;  %s1185_s21 = sphi %s1231_s21, %s1435_s21   ;;  %s1181_s20 = sphi %s1229_s20, %s1434_s20   ;;  %s1177_s19 = sphi %s1227_s19, %s1433_s19   ;;  %s1173_s18 = sphi %s1225_s18, %s1432_s18  }
   0x4   : > { %p29_p0 = scmp.ge.s32.totalorder %s28_s24, 5  ;;  %p51_p1 = scmp.ne.s32.totalorder %s1177_s19, %s1173_s18 }
   0x5   : > { %p52_p2 = scmp.eq.s32.totalorder %s1189_s22, 0  ;;  %s44_s26 = sadd.s32 1, %s1177_s19 }
   0x6   : > { %s1437_s24 = smov (%p29_p0, %s28_s24), 0  ;;  %p950_p5 = scmp.ge.s32.totalorder %s1189_s22, 5 }
   0x7   : > { %p53_p3 = por %p52_p2, %p51_p1  ;;  %s40_s25 = ssub.s32 %s1185_s21, %s1437_s24 }
   0x8   : > { %p42_p4 = scmp.eq.s32.totalorder %s40_s25, 0  ;;  %237 = sbr.rel (%p950_p5) target bundleno = 33 (0x21), region = 28 }
   0xa   : > { %s1261_s27 = scalar_select %p42_p4, %s1177_s19, %s44_s26  }
   0xd   : > { %240 = sbr.rel (!%p53_p3) target bundleno = 33 (0x21), region = 32  ;;  %s242_s28 = sand.u32 (%p53_p3), 1, %s1177_s19  }
   0xe   : > { %s952_s29 = sshll.u32 (%p53_p3), %s1185_s21, 2  ;;  %s951_s30 = sshll.u32 (%p53_p3), %s242_s28, 6 }
   0xf   : > { %s1269_s8 = scalar_lea.vmem (%p53_p3), %s1426_s0, %s952_s29  ;;  %s244_s9 = scalar_lea.vmem (%p53_p3), [#allocation3], %s951_s30 }
  0x10   : > { %v266_v0 = vld [vmem:[%s1269_s8] sm:$0xf] (%p53_p3)  ;;  %v268_v1 = vld [vmem:[%s1269_s8 + $0x14] sm:$0xf] (%p53_p3)  ;;  %v270_v2 = vld [vmem:[%s1269_s8 + $0x28] sm:$0xf] (%p53_p3) }
  0x11   : > { %267 = vst [vmem:[%s244_s9] sm:$0xf] (%p53_p3), %v266_v0  ;;  %v272_v3 = vld [vmem:[%s1269_s8 + $0x3c] sm:$0xf] (%p53_p3)  ;;  %v274_v4 = vld [vmem:[%s1269_s8 + $0x50] sm:$0xf] (%p53_p3) }
  0x12   : > { %269 = vst [vmem:[%s244_s9 + $0x4] sm:$0xf] %v268_v1  ;;  %v276_v5 = vld [vmem:[%s1269_s8 + $0x64] sm:$0xf]  ;;  %v278_v6 = vld [vmem:[%s1269_s8 + $0x78] sm:$0xf] }
  0x13   : > { %271 = vst [vmem:[%s244_s9 + $0x8] sm:$0xf] %v270_v2  ;;  %v280_v7 = vld [vmem:[%s1269_s8 + $0x8c] sm:$0xf]  ;;  %v282_v8 = vld [vmem:[%s1269_s8 + $0xa0] sm:$0xf] }
  0x14   : > { %273 = vst [vmem:[%s244_s9 + $0xc] sm:$0xf] %v272_v3  ;;  %v284_v9 = vld [vmem:[%s1269_s8 + $0xb4] sm:$0xf]  ;;  %v286_v10 = vld [vmem:[%s1269_s8 + $0xc8] sm:$0xf] }
  0x15   : > { %275 = vst [vmem:[%s244_s9 + $0x10] sm:$0xf] %v274_v4  ;;  %v288_v11 = vld [vmem:[%s1269_s8 + $0xdc] sm:$0xf]  ;;  %v290_v12 = vld [vmem:[%s1269_s8 + $0xf0] sm:$0xf] }
  0x16   : > { %277 = vst [vmem:[%s244_s9 + $0x14] sm:$0xf] %v276_v5  ;;  %v292_v13 = vld [vmem:[%s1269_s8 + $0x104] sm:$0xf]  ;;  %v294_v14 = vld [vmem:[%s1269_s8 + $0x118] sm:$0xf] }
  0x17   : > { %279 = vst [vmem:[%s244_s9 + $0x18] sm:$0xf] %v278_v6  ;;  %v296_v15 = vld [vmem:[%s1269_s8 + $0x12c] sm:$0xf] }
  0x18   : > { %281 = vst [vmem:[%s244_s9 + $0x1c] sm:$0xf] %v280_v7 }
  0x19   : > { %283 = vst [vmem:[%s244_s9 + $0x20] sm:$0xf] %v282_v8 }
  0x1a   : > { %285 = vst [vmem:[%s244_s9 + $0x24] sm:$0xf] %v284_v9 }
  0x1b   : > { %287 = vst [vmem:[%s244_s9 + $0x28] sm:$0xf] %v286_v10 }
  0x1c   : > { %289 = vst [vmem:[%s244_s9 + $0x2c] sm:$0xf] %v288_v11 }
  0x1d   : > { %291 = vst [vmem:[%s244_s9 + $0x30] sm:$0xf] %v290_v12 }
  0x1e   : > { %293 = vst [vmem:[%s244_s9 + $0x34] sm:$0xf] %v292_v13 }
  0x1f   : > { %295 = vst [vmem:[%s244_s9 + $0x38] sm:$0xf] %v294_v14 }
  0x20   : > { %297 = vst [vmem:[%s244_s9 + $0x3c] sm:$0xf] %v296_v15 }
  0x21 PF: > { %p953_p6 = scmp.ge.s32.totalorder %s1189_s22, 1  ;;  %p364_p7 = scmp.lt.s32.totalorder %s1189_s22, 6 }
  0x23   : > { %p365_p8 = pnand %p953_p6, %p364_p7 }
  0x24   : > { %s371_s10 = sand.u32 (!%p365_p8), 1, %s1173_s18   ;;  %s955_s11 = sshll.u32 (!%p365_p8), %s1181_s20, 4 }
  0x25   : > { %368 = sbr.rel (%p365_p8) target bundleno = 288 (0x120), region = 77  ;;  %s954_s12 = sshll.u32 (!%p365_p8), %s371_s10, 6 }
  0x26   : > { %p417_p9 = scmp.lt.s32.totalorder (!%p365_p8), %s955_s11, 79  ;;  %s1296_s17 = scalar_lea.vmem (!%p365_p8), [#allocation3], %s954_s12 }
  0x27   : > { %p957_p10 = scmp.ne.s32.totalorder (!%p365_p8), %s1181_s20, 0 }
  0x2a   : > { %s1439_s11 = smov (!%p417_p9, %s955_s11), 79  ;;  %444 = sbr.rel (%p957_p10) target bundleno = 64 (0x40), region = 85 }
  0x2b   : > { %s956_s13 = sshll.u32 %s1439_s11, 2 }
  0x2c   : > { %s1294_s16 = scalar_lea.vmem %s1427_s1, %s956_s13 }
  0x2f   : > { %v1191_v16 = vmov 0.0  }
  0x30   : > { %445 = vst [vmem:[#allocation2 + $0x30] sm:$0xff] %v1191_v16 }
  0x31   : > { %446 = vst [vmem:[#allocation2] sm:$0xff] %v1191_v16 }
  0x32   : > { %447 = vst [vmem:[#allocation2 + $0x58] sm:$0xff] %v1191_v16 }
  0x33   : > { %448 = vst [vmem:[#allocation2 + $0x18] sm:$0xff] %v1191_v16 }
  0x34   : > { %449 = vst [vmem:[#allocation2 + $0x50] sm:$0xff] %v1191_v16 }
  0x35   : > { %450 = vst [vmem:[#allocation2 + $0x68] sm:$0xff] %v1191_v16 }
  0x36   : > { %451 = vst [vmem:[#allocation2 + $0x8] sm:$0xff] %v1191_v16 }
  0x37   : > { %452 = vst [vmem:[#allocation2 + $0x48] sm:$0xff] %v1191_v16 }
  0x38   : > { %453 = vst [vmem:[#allocation2 + $0x40] sm:$0xff] %v1191_v16 }
  0x39   : > { %454 = vst [vmem:[#allocation2 + $0x20] sm:$0xff] %v1191_v16 }
  0x3a   : > { %455 = vst [vmem:[#allocation2 + $0x10] sm:$0xff] %v1191_v16 }
  0x3b   : > { %456 = vst [vmem:[#allocation2 + $0x38] sm:$0xff] %v1191_v16 }
  0x3c   : > { %457 = vst [vmem:[#allocation2 + $0x60] sm:$0xff] %v1191_v16 }
  0x3d   : > { %458 = vst [vmem:[#allocation2 + $0x70] sm:$0xff] %v1191_v16 }
  0x3e   : > { %459 = vst [vmem:[#allocation2 + $0x78] sm:$0xff] %v1191_v16 }
  0x3f   : > { %460 = vst [vmem:[#allocation2 + $0x28] sm:$0xff] %v1191_v16 }
  0x40 PF: > { %v1042_v17 = vld [vmem:[%s1294_s16 + $0x38] sm:$0xff]  ;;  %v1041_v18 = vld [vmem:[%s1294_s16 + $0x30] sm:$0xff]  ;;  %v1040_v19 = vld [vmem:[%s1294_s16 + $0x28] sm:$0xff]  ;;  %p1022_p11 = scmp.ne.s32.totalorder %s1181_s20, 4 }
  0x41   : > { %605 = vmatpush.bf16.msra.mxu0 %v1042_v17  ;;  %1043 = vmatpush.bf16.msra.mxu1 %v1042_v17  ;;  %v1039_v20 = vld [vmem:[%s1294_s16 + $0x20] sm:$0xff]  ;;  %v1038_v21 = vld [vmem:[%s1294_s16 + $0x18] sm:$0xff]  ;;  %v1037_v22 = vld [vmem:[%s1294_s16 + $0x10] sm:$0xff] }
  0x42   : > { %1044 = vmatpush.bf16.msra.mxu2 %v1042_v17  ;;  %1045 = vmatpush.bf16.msra.mxu3 %v1042_v17  ;;  %v1036_v23 = vld [vmem:[%s1294_s16 + $0x8] sm:$0xff]  ;;  %v1035_v24 = vld [vmem:[%s1294_s16] sm:$0xff]  ;;  %v1029_v26 = vld [vmem:[%s1296_s17 + $0x10] sm:$0xff] }
  0x43   : > { %v1027_v25 = vld [vmem:[%s1296_s17] sm:$0xff]  ;;  %v1033_v28 = vld [vmem:[%s1296_s17 + $0x30] sm:$0xff]  ;;  %v1028_v29 = vld [vmem:[%s1296_s17 + $0x8] sm:$0xff] }
  0x44   : > { %v1031_v27 = vld [vmem:[%s1296_s17 + $0x20] sm:$0xff]  ;;  %v1030_v30 = vld [vmem:[%s1296_s17 + $0x18] sm:$0xff]  ;;  %v1032_v31 = vld [vmem:[%s1296_s17 + $0x28] sm:$0xff] }
  0x45   : > { %606 = vmatpush.bf16.msra.mxu0 %v1041_v18  ;;  %1046 = vmatpush.bf16.msra.mxu1 %v1041_v18  ;;  %v1034_v32 = vld [vmem:[%s1296_s17 + $0x38] sm:$0xff]  ;;  %v461_v33 = vld [vmem:[#allocation2 + $0x30] sm:$0xff]  ;;  %v469_v39 = vld [vmem:[#allocation2 + $0x40] sm:$0xff] }
  0x46   : > { %1047 = vmatpush.bf16.msra.mxu2 %v1041_v18  ;;  %1048 = vmatpush.bf16.msra.mxu3 %v1041_v18  ;;  %v465_v34 = vld [vmem:[#allocation2 + $0x50] sm:$0xff]  ;;  %v473_v40 = vld [vmem:[#allocation2 + $0x60] sm:$0xff]  ;;  %v466_v42 = vld [vmem:[#allocation2 + $0x68] sm:$0xff] }
  0x47   : > { %v462_v41 = vld [vmem:[#allocation2] sm:$0xff]  ;;  %v474_v52 = vld [vmem:[#allocation2 + $0x70] sm:$0xff]  ;;  %v463_v53 = vld [vmem:[#allocation2 + $0x58] sm:$0xff] }
  0x48   : > { %v470_v51 = vld [vmem:[#allocation2 + $0x20] sm:$0xff]  ;;  %v467_v54 = vld [vmem:[#allocation2 + $0x8] sm:$0xff]  ;;  %v471_v63 = vld [vmem:[#allocation2 + $0x10] sm:$0xff] }
  0x49   : > { %607 = vmatpush.bf16.msra.mxu0 %v1040_v19  ;;  %1049 = vmatpush.bf16.msra.mxu1 %v1040_v19  ;;  %v475_v0 = vld [vmem:[#allocation2 + $0x78] sm:$0xff]  ;;  %v468_v2 = vld [vmem:[#allocation2 + $0x48] sm:$0xff] }
  0x4a   : > { %1050 = vmatpush.bf16.msra.mxu2 %v1040_v19  ;;  %1051 = vmatpush.bf16.msra.mxu3 %v1040_v19  ;;  %v464_v1 = vld [vmem:[#allocation2 + $0x18] sm:$0xff]  ;;  %v476_v12 = vld [vmem:[#allocation2 + $0x28] sm:$0xff] }
  0x4b   : > { %v472_v11 = vld [vmem:[#allocation2 + $0x38] sm:$0xff] }
  0x4d   : > { %608 = vmatpush.bf16.msra.mxu0 %v1039_v20  ;;  %1052 = vmatpush.bf16.msra.mxu1 %v1039_v20 }
  0x4e   : > { %1053 = vmatpush.bf16.msra.mxu2 %v1039_v20  ;;  %1054 = vmatpush.bf16.msra.mxu3 %v1039_v20 }
  0x51   : > { %609 = vmatpush.bf16.msra.mxu0 %v1038_v21  ;;  %1055 = vmatpush.bf16.msra.mxu1 %v1038_v21 }
  0x52   : > { %1056 = vmatpush.bf16.msra.mxu2 %v1038_v21  ;;  %1057 = vmatpush.bf16.msra.mxu3 %v1038_v21 }
  0x55   : > { %610 = vmatpush.bf16.msra.mxu0 %v1037_v22  ;;  %1058 = vmatpush.bf16.msra.mxu1 %v1037_v22 }
  0x56   : > { %1059 = vmatpush.bf16.msra.mxu2 %v1037_v22  ;;  %1060 = vmatpush.bf16.msra.mxu3 %v1037_v22 }
  0x59   : > { %611 = vmatpush.bf16.msra.mxu0 %v1036_v23  ;;  %1061 = vmatpush.bf16.msra.mxu1 %v1036_v23 }
  0x5a   : > { %1062 = vmatpush.bf16.msra.mxu2 %v1036_v23  ;;  %1063 = vmatpush.bf16.msra.mxu3 %v1036_v23 }
  0x5d   : > { %612 = vmatpush.bf16.msra.mxu0 %v1035_v24  ;;  %1064 = vmatpush.bf16.msra.mxu1 %v1035_v24 }
  0x5e   : > { %1065 = vmatpush.bf16.msra.mxu2 %v1035_v24  ;;  %1066 = vmatpush.bf16.msra.mxu3 %v1035_v24 }
  0x60   : > { %613 = vmatmul.bf16.vlgmr.msra.gmra.mxu0 %v1027_v25  ;;  %623 = vmatmul.bf16.vlgmr.msra.gmra.mxu1 %v1029_v26 }
  0x61   : > { %633 = vmatmul.bf16.vlgmr.msra.gmra.mxu2 %v1031_v27  ;;  %643 = vmatmul.bf16.vlgmr.msra.gmra.mxu3 %v1033_v28 }
  0x70   : > { %618 = vmatmul.bf16.gmra.mxu0 %v1028_v29  ;;  %628 = vmatmul.bf16.gmra.mxu1 %v1030_v30 }
  0x71   : > { %638 = vmatmul.bf16.gmra.mxu2 %v1032_v31  ;;  %648 = vmatmul.bf16.gmra.mxu3 %v1034_v32 }
  0xdd   : > { %v614_v35 = vpop.f32.mrf.mxu0  ;;  %v624_v36 = vpop.f32.mrf.mxu1 }
  0xde   : > { %v654_v37 = vadd.f32 %v614_v35, %v461_v33  ;;  %v658_v38 = vadd.f32 %v624_v36, %v465_v34 }
  0xe0   : > { %670 = vst [vmem:[#allocation2 + $0x30] sm:$0xff] %v654_v37 }
  0xe1   : > { %674 = vst [vmem:[#allocation2 + $0x50] sm:$0xff] %v658_v38 }
  0xe4   : > { %v634_v43 = vpop.f32.mrf.mxu2  ;;  %v644_v44 = vpop.f32.mrf.mxu3 }
  0xe5   : > { %v662_v45 = vadd.f32 %v634_v43, %v469_v39  ;;  %v666_v46 = vadd.f32 %v644_v44, %v473_v40  ;;  %v616_v47 = vpop.f32.mrf.mxu0  ;;  %v626_v48 = vpop.f32.mrf.mxu1 }
  0xe6   : > { %v655_v49 = vadd.f32 %v616_v47, %v462_v41  ;;  %v659_v50 = vadd.f32 %v626_v48, %v466_v42 }
  0xe7   : > { %678 = vst [vmem:[#allocation2 + $0x40] sm:$0xff] %v662_v45 }
  0xe8   : > { %682 = vst [vmem:[#allocation2 + $0x60] sm:$0xff] %v666_v46 }
  0xe9   : > { %671 = vst [vmem:[#allocation2] sm:$0xff] %v655_v49 }
  0xea   : > { %675 = vst [vmem:[#allocation2 + $0x68] sm:$0xff] %v659_v50 }
  0xec   : > { %v636_v55 = vpop.f32.mrf.mxu2  ;;  %v646_v56 = vpop.f32.mrf.mxu3 }
  0xed   : > { %v663_v57 = vadd.f32 %v636_v55, %v470_v51  ;;  %v667_v58 = vadd.f32 %v646_v56, %v474_v52  ;;  %v619_v59 = vpop.f32.mrf.mxu0  ;;  %v629_v60 = vpop.f32.mrf.mxu1 }
  0xee   : > { %v656_v61 = vadd.f32 %v619_v59, %v463_v53  ;;  %v660_v62 = vadd.f32 %v629_v60, %v467_v54 }
  0xef   : > { %679 = vst [vmem:[#allocation2 + $0x20] sm:$0xff] %v663_v57 }
  0xf0   : > { %683 = vst [vmem:[#allocation2 + $0x70] sm:$0xff] %v667_v58 }
  0xf1   : > { %672 = vst [vmem:[#allocation2 + $0x58] sm:$0xff] %v656_v61 }
  0xf2   : > { %676 = vst [vmem:[#allocation2 + $0x8] sm:$0xff] %v660_v62 }
  0xf4   : > { %v639_v3 = vpop.f32.mrf.mxu2  ;;  %v649_v4 = vpop.f32.mrf.mxu3 }
  0xf5   : > { %v664_v5 = vadd.f32 %v639_v3, %v471_v63  ;;  %v668_v6 = vadd.f32 %v649_v4, %v475_v0  ;;  %v621_v7 = vpop.f32.mrf.mxu0  ;;  %v631_v8 = vpop.f32.mrf.mxu1 }
  0xf6   : > { %v657_v9 = vadd.f32 %v621_v7, %v464_v1  ;;  %v661_v10 = vadd.f32 %v631_v8, %v468_v2 }
  0xf7   : > { %680 = vst [vmem:[#allocation2 + $0x10] sm:$0xff] %v664_v5 }
  0xf8   : > { %684 = vst [vmem:[#allocation2 + $0x78] sm:$0xff] %v668_v6 }
  0xf9   : > { %673 = vst [vmem:[#allocation2 + $0x18] sm:$0xff] %v657_v9 }
  0xfa   : > { %677 = vst [vmem:[#allocation2 + $0x48] sm:$0xff] %v661_v10 }
  0xfc   : > { %v641_v13 = vpop.f32.mrf.mxu2  ;;  %v651_v14 = vpop.f32.mrf.mxu3  ;;  %689 = sbr.rel (%p1022_p11) target bundleno = 282 (0x11a), region = 89 }
  0xfd   : > { %v665_v15 = vadd.f32 %v641_v13, %v472_v11  ;;  %v669_v16 = vadd.f32 %v651_v14, %v476_v12 }
  0xff   : > { %681 = vst [vmem:[#allocation2 + $0x38] sm:$0xff] %v665_v15 }
 0x100   : > { %685 = vst [vmem:[#allocation2 + $0x28] sm:$0xff] %v669_v16 }
 0x101   : > { %v690_v17 = vld [vmem:[#allocation2 + $0x30] sm:$0xff]  ;;  %v1319_v18 = vld [vmem:[%s1428_s2] ss:$0 sm:$0xff]  ;;  %v692_v22 = vld [vmem:[#allocation2 + $0x58] sm:$0xff] }
 0x102   : > { %v1324_v19 = vld [vmem:[%s1429_s3] ss:$0 sm:$0xff]  ;;  %v710_v20 = vmul.f32 %v1319_v18, %v690_v17  ;;  %v747_v25 = vld [vmem:[%s1430_s4 + $0x8] sm:$0xff]  ;;  %v712_v26 = vmul.f32 %v1319_v18, %v692_v22  ;;  %v693_v27 = vld [vmem:[#allocation2 + $0x18] sm:$0xff] }
 0x103   : > { %v691_v21 = vld [vmem:[#allocation2] sm:$0xff]  ;;  %v748_v29 = vld [vmem:[%s1430_s4 + $0x10] sm:$0xff]  ;;  %v713_v30 = vmul.f32 %v1319_v18, %v693_v27  ;;  %v695_v32 = vld [vmem:[#allocation2 + $0x68] sm:$0xff] }
 0x104   : > { %v746_v23 = vld [vmem:[%s1430_s4] sm:$0xff]  ;;  %v711_v24 = vmul.f32 %v1319_v18, %v691_v21  ;;  %v730_v28 = vadd.f32 %v1324_v19, %v710_v20  ;;  %v694_v31 = vld [vmem:[#allocation2 + $0x50] sm:$0xff]  ;;  %v732_v34 = vadd.f32 %v1324_v19, %v712_v26  ;;  %v749_v35 = vld [vmem:[%s1430_s4 + $0x18] sm:$0xff]  ;;  %v715_v37 = vmul.f32 %v1319_v18, %v695_v32 }
 0x105   : > { %v714_v36 = vmul.f32 %v1319_v18, %v694_v31  ;;  %v696_v38 = vld [vmem:[#allocation2 + $0x8] sm:$0xff]  ;;  %v733_v40 = vadd.f32 %v1324_v19, %v713_v30  ;;  %v750_v41 = vld [vmem:[%s1430_s4 + $0x20] sm:$0xff]  ;;  %v752_v49 = vld [vmem:[%s1430_s4 + $0x30] sm:$0xff] }
 0x106   : > { %v731_v33 = vadd.f32 %v1324_v19, %v711_v24  ;;  %v762_v39 = vadd.f32 %v746_v23, %v730_v28  ;;  %v751_v42 = vld [vmem:[%s1430_s4 + $0x28] sm:$0xff]  ;;  %v716_v43 = vmul.f32 %v1319_v18, %v696_v38  ;;  %v764_v46 = vadd.f32 %v748_v29, %v732_v34  ;;  %v698_v50 = vld [vmem:[#allocation2 + $0x40] sm:$0xff]  ;;  %v700_v56 = vld [vmem:[#allocation2 + $0x10] sm:$0xff] }
 0x107   : > { %v697_v44 = vld [vmem:[#allocation2 + $0x48] sm:$0xff]  ;;  %v734_v47 = vadd.f32 %v1324_v19, %v714_v36  ;;  %v735_v48 = vadd.f32 %v1324_v19, %v715_v37  ;;  %v765_v52 = vadd.f32 %v749_v35, %v733_v40  ;;  %v699_v55 = vld [vmem:[#allocation2 + $0x20] sm:$0xff]  ;;  %v753_v61 = vld [vmem:[%s1430_s4 + $0x38] sm:$0xff]  ;;  %v718_v2 = vmul.f32 %v1319_v18, %v698_v50 }
 0x108   : > { %v763_v45 = vadd.f32 %v747_v25, %v731_v33  ;;  %v778_v51 = vmax.f32 %v762_v39, 0.0  ;;  %v736_v53 = vadd.f32 %v1324_v19, %v716_v43  ;;  %v717_v54 = vmul.f32 %v1319_v18, %v697_v44  ;;  %v701_v62 = vld [vmem:[#allocation2 + $0x38] sm:$0xff]  ;;  %v702_v3 = vld [vmem:[#allocation2 + $0x60] sm:$0xff]  ;;  %v703_v4 = vld [vmem:[#allocation2 + $0x70] sm:$0xff] }
 0x109   : > { %v780_v58 = vmax.f32 %v764_v46, 0.0  ;;  %v766_v59 = vadd.f32 %v750_v41, %v734_v47  ;;  %v767_v60 = vadd.f32 %v751_v42, %v735_v48  ;;  %v781_v63 = vmax.f32 %v765_v52, 0.0  ;;  %v754_v7 = vld [vmem:[%s1430_s4 + $0x40] sm:$0xff]  ;;  %v704_v10 = vld [vmem:[#allocation2 + $0x78] sm:$0xff]  ;;  %v755_v14 = vld [vmem:[%s1430_s4 + $0x48] sm:$0xff] }
 0x10a   : > { %v779_v57 = vmax.f32 %v763_v45, 0.0  ;;  %794 = vst [vmem:[#allocation4] sm:$0xff] %v778_v51  ;;  %v768_v0 = vadd.f32 %v752_v49, %v736_v53  ;;  %v737_v1 = vadd.f32 %v1324_v19, %v717_v54  ;;  %v719_v8 = vmul.f32 %v1319_v18, %v699_v55  ;;  %v756_v15 = vld [vmem:[%s1430_s4 + $0x50] sm:$0xff]  ;;  %v757_v21 = vld [vmem:[%s1430_s4 + $0x58] sm:$0xff]  ;;  %v705_v24 = vld [vmem:[#allocation2 + $0x28] sm:$0xff] }
 0x10b   : > { %v782_v5 = vmax.f32 %v766_v59, 0.0  ;;  %v783_v6 = vmax.f32 %v767_v60, 0.0  ;;  %v720_v9 = vmul.f32 %v1319_v18, %v700_v56  ;;  %796 = vst [vmem:[#allocation4 + $0x10] sm:$0xff] %v780_v58  ;;  %v738_v13 = vadd.f32 %v1324_v19, %v718_v2  ;;  %v758_v28 = vld [vmem:[%s1430_s4 + $0x60] sm:$0xff]  ;;  %v759_v29 = vld [vmem:[%s1430_s4 + $0x68] sm:$0xff]  ;;  %v760_v35 = vld [vmem:[%s1430_s4 + $0x70] sm:$0xff] }
 0x10c   : > { %795 = vst [vmem:[#allocation4 + $0x8] sm:$0xff] %v779_v57  ;;  %v784_v11 = vmax.f32 %v768_v0, 0.0  ;;  %v769_v12 = vadd.f32 %v753_v61, %v737_v1  ;;  %v721_v16 = vmul.f32 %v1319_v18, %v701_v62  ;;  %v739_v17 = vadd.f32 %v1324_v19, %v719_v8  ;;  %v761_v44 = vld [vmem:[%s1430_s4 + $0x78] sm:$0xff] }
 0x10d   : > { %797 = vst [vmem:[#allocation4 + $0x18] sm:$0xff] %v781_v63  ;;  %v740_v20 = vadd.f32 %v1324_v19, %v720_v9  ;;  %v722_v22 = vmul.f32 %v1319_v18, %v702_v3  ;;  %v723_v23 = vmul.f32 %v1319_v18, %v703_v4  ;;  %v770_v26 = vadd.f32 %v754_v7, %v738_v13 }
 0x10e   : > { %798 = vst [vmem:[#allocation4 + $0x20] sm:$0xff] %v782_v5  ;;  %v785_v25 = vmax.f32 %v769_v12, 0.0  ;;  %v741_v27 = vadd.f32 %v1324_v19, %v721_v16  ;;  %v724_v30 = vmul.f32 %v1319_v18, %v704_v10  ;;  %v771_v31 = vadd.f32 %v755_v14, %v739_v17 }
 0x10f   : > { %799 = vst [vmem:[#allocation4 + $0x28] sm:$0xff] %v783_v6  ;;  %v772_v32 = vadd.f32 %v756_v15, %v740_v20  ;;  %v742_v33 = vadd.f32 %v1324_v19, %v722_v22  ;;  %v743_v34 = vadd.f32 %v1324_v19, %v723_v23  ;;  %v786_v36 = vmax.f32 %v770_v26, 0.0 }
 0x110   : > { %800 = vst [vmem:[#allocation4 + $0x30] sm:$0xff] %v784_v11  ;;  %v773_v37 = vadd.f32 %v757_v21, %v741_v27  ;;  %v744_v38 = vadd.f32 %v1324_v19, %v724_v30  ;;  %v725_v39 = vmul.f32 %v1319_v18, %v705_v24  ;;  %v787_v40 = vmax.f32 %v771_v31, 0.0 }
 0x111   : > { %801 = vst [vmem:[#allocation4 + $0x38] sm:$0xff] %v785_v25  ;;  %v788_v41 = vmax.f32 %v772_v32, 0.0  ;;  %v774_v42 = vadd.f32 %v758_v28, %v742_v33  ;;  %v775_v43 = vadd.f32 %v759_v29, %v743_v34 }
 0x112   : > { %802 = vst [vmem:[#allocation4 + $0x40] sm:$0xff] %v786_v36  ;;  %v789_v45 = vmax.f32 %v773_v37, 0.0  ;;  %v776_v46 = vadd.f32 %v760_v35, %v744_v38  ;;  %v745_v47 = vadd.f32 %v1324_v19, %v725_v39 }
 0x113   : > { %803 = vst [vmem:[#allocation4 + $0x48] sm:$0xff] %v787_v40  ;;  %v790_v48 = vmax.f32 %v774_v42, 0.0  ;;  %v791_v49 = vmax.f32 %v775_v43, 0.0 }
 0x114   : > { %804 = vst [vmem:[#allocation4 + $0x50] sm:$0xff] %v788_v41  ;;  %v792_v50 = vmax.f32 %v776_v46, 0.0  ;;  %v777_v18 = vadd.f32 %v761_v44, %v745_v47 }
 0x115   : > { %805 = vst [vmem:[#allocation4 + $0x58] sm:$0xff] %v789_v45 }
 0x116   : > { %806 = vst [vmem:[#allocation4 + $0x60] sm:$0xff] %v790_v48  ;;  %v793_v51 = vmax.f32 %v777_v18, 0.0 }
 0x117   : > { %807 = vst [vmem:[#allocation4 + $0x68] sm:$0xff] %v791_v49 }
 0x118   : > { %808 = vst [vmem:[#allocation4 + $0x70] sm:$0xff] %v792_v50 }
 0x119   : > { %809 = vst [vmem:[#allocation4 + $0x78] sm:$0xff] %v793_v51 }
 0x11a PF: > { %p1071_p12 = scmp.eq.s32.totalorder %s945_s23, 4  ;;  %s821_s18 = sshll.u32 %s1431_s5, 4  ;;  %s822_s18 = int_to_ptr.hbm [resolvable:$true] %s821_s18 }
 0x11b   : > { %s1192_s25 = smov [#allocation4]   ;;  %s1193_s28 = smov 128  }
 0x11c   : > { %s819_s26 = sshll.u32 %s1192_s25, 4  ;;  %s1194_s29 = smov 8   ;;  %s820_s26 = int_to_ptr.vmem [resolvable:$true] %s819_s26 }
 0x11d   : > { %1068 = dma.vmem_to_hbm [thread:$0]  (%p1071_p12), %s820_s26, 2048, %s822_s18, [#allocation5], %s1193_s28, %s1193_s28, %s1194_s29  }
 0x11e   : > { %1168 = dma.done.wait (%p1071_p12), [#allocation5], 2048  }
 0x11f   : > { %1170 = vsyncadd (%p1071_p12), [#allocation5], 4294965248 }
 0x120 PF: > { %s16_s22 = sadd.s32 1, %s1189_s22   ;;  %s1432_s18 = smov %s1177_s19 }
 0x121   : > { %p13_p13 = scmp.ge.s32.totalorder %s16_s22, 7   ;;  %s1433_s19 = smov %s1261_s27 }
 0x122   : > { %s1434_s20 = smov %s1185_s21  ;;  %s1435_s21 = smov %s1437_s24 }
 0x123   :  { %15 = sbr.rel (!%p13_p13) target bundleno = 3 (0x3), region = 134 }
 0x128   :  { %838 = vsyncpa [#allocation5], 1 }
 0x129   :  { %840 = vsyncpa [#allocation5 + $0x1], 1 }

</bundles_post_ra>
